<compile_context>
chip_gen: v7x
topology: tpu7x:2x2x1
jax: 0.10.0
libtpu: 0.0.40
codegen_flags: <defaults>
</compile_context>

<pallas_src>
import functools
import math

import jax
import jax.numpy as jnp
from jax import lax
from jax.experimental import pallas as pl
from jax.experimental.pallas import tpu as pltpu

# ----------------------- symbol table (mirrors common.py) -----------------------
_letters_chars = 'INUabdefghijkmnoprstuvwyz'
_multichar_phonemes = ['by', 'ch', 'cl', 'gy', 'hy', 'ky', 'my', 'ny', 'pau',
                       'py', 'ry', 'sh', 'ts']
_pad = '_'
_punctuation = ("、。，．・？！〽-…~《》%&'(),-.0123456789:?"
                "ABCDEFGHIJKLMNOPQRSTUVWXYZabcdefghijklmnopqrstuvwxyz"
                "①②③④⑤⑥⑦⑧⑨⑩⑪⑫⑬⑭⑮⑯⑰⑱⑲⑳⓪")
_unk = '<UNK>'
_symbols = sorted(list(set([_pad, _unk] + list(_punctuation)
                           + list(_letters_chars) + _multichar_phonemes)))
SYMBOL_TO_ID = {s: i for i, s in enumerate(_symbols)}
PAD_ID = SYMBOL_TO_ID[_pad]


# --------------------------------- kernel ---------------------------------------
def _encoder_layer_kernel(x_ref, kbias_ref,
                          inw_ref, outw_ref, f1w_ref, f2w_ref,
                          small_ref, inb_ref, f1b_ref,
                          melw_ref, melb_ref,
                          o_ref,
                          x_carry,
                          *, n_heads, use_bf16_eup):
    """One (batch tile, encoder layer) grid step.

    x_carry holds the residual stream (bb, T, H) in f32 across the layer axis.
    At l == L-1 the mel head is applied and (bb, n_mels, T) is written.
    """
    l = pl.program_id(1)
    n_layers = pl.num_programs(1)

    # ---- init residual stream from the embedded text on the first layer ----
    @pl.when(l == 0)
    def _():
        x_carry[...] = x_ref[...]

    x = x_carry[...]                       # (bb, T, H) f32
    kbias = kbias_ref[...]                 # (bb, 1, T) additive key-padding bias
    bb, T, H = x.shape
    hd = H // n_heads
    bf16 = jnp.bfloat16

    # packed small per-layer params: rows = out_b, ln1_w, ln1_b, ln2_w, ln2_b, f2_b
    small = small_ref[0]                   # (6, H) f32
    out_b, ln1_w, ln1_b = small[0], small[1], small[2]
    ln2_w, ln2_b, f2_b = small[3], small[4], small[5]
    in_b = inb_ref[0]                      # (1, 3H) f32 (q-part pre-scaled)
    f1_b = f1b_ref[0]                      # (1, F)  f32

    def layernorm(v, w, b):
        mu = jnp.mean(v, axis=-1, keepdims=True)
        var = jnp.mean(jnp.square(v - mu), axis=-1, keepdims=True)
        return (v - mu) * lax.rsqrt(var + 1e-5) * w + b

    c_gelu = math.sqrt(2.0 / math.pi)

    def gelu(v):
        # TODO(synk): PyTorch F.gelu default is the exact erf GELU; tanh
        # approximation is used here (erf lowering is not guaranteed in Mosaic).
        if use_bf16_eup:
            v = v.astype(bf16)             # bf16 EUP ~2x throughput on v6e/v7x
        return 0.5 * v * (1.0 + jnp.tanh(c_gelu * (v + 0.044715 * v * v * v)))

    xb = x.astype(bf16)

    # ---- multi-head self attention (post-norm layer, batch_first) ----
    # 1/sqrt(hd) is already folded into the q columns of in_w / in_b.
    qkv = jnp.einsum('bth,hc->btc', xb, inw_ref[0],
                     preferred_element_type=jnp.float32) + in_b   # (bb, T, 3H)

    outw = outw_ref[0]                     # (H, H) bf16
    attn = None
    for h in range(n_heads):
        qh = qkv[:, :, 0 * H + h * hd:0 * H + (h + 1) * hd].astype(bf16)
        kh = qkv[:, :, 1 * H + h * hd:1 * H + (h + 1) * hd].astype(bf16)
        vh = qkv[:, :, 2 * H + h * hd:2 * H + (h + 1) * hd].astype(bf16)
        # TODO(synk): for T >~ 1k, tile over key blocks (flash-style online
        # softmax) to bound the (T, T) f32 temporaries on v7x's 64 MiB VMEM.
        s = jnp.einsum('bqd,bkd->bqk', qh, kh,
                       preferred_element_type=jnp.float32)        # (bb, T, T)
        s = s + kbias                                             # key padding mask
        s = s - jnp.max(s, axis=-1, keepdims=True)                # f32 for stability
        p = jnp.exp(s.astype(bf16) if use_bf16_eup else s)
        denom = jnp.sum(p.astype(jnp.float32), axis=-1, keepdims=True)
        inv = pl.reciprocal(denom, approx=True)                   # (bb, T, 1)
        ctx = jnp.einsum('bqk,bkd->bqd', p.astype(bf16), vh,
                         preferred_element_type=jnp.float32) * inv  # deferred norm
        # accumulate the output projection per head (no ctx scratch round-trip)
        part = jnp.einsum('bqd,dh->bqh', ctx.astype(bf16),
                          outw[h * hd:(h + 1) * hd, :],
                          preferred_element_type=jnp.float32)
        attn = part if attn is None else attn + part

    attn = attn + out_b
    x = layernorm(x + attn, ln1_w, ln1_b)

    # ---- feed forward: linear1 -> gelu -> linear2 ----
    hid = jnp.einsum('bth,hf->btf', x.astype(bf16), f1w_ref[0],
                     preferred_element_type=jnp.float32) + f1_b
    hid = gelu(hid)
    ff = jnp.einsum('btf,fh->bth', hid.astype(bf16), f2w_ref[0],
                    preferred_element_type=jnp.float32) + f2_b
    x = layernorm(x + ff, ln2_w, ln2_b)

    x_carry[...] = x

    # ---- mel projection head, emitted already transposed as (n_mels, T) ----
    @pl.when(l == n_layers - 1)
    def _():
        melw = melw_ref[...]               # (n_mels, H) bf16
        melb = melb_ref[...]               # (n_mels, 1) f32
        xo = x.astype(bf16)
        for b in range(bb):                # (n_mels, H) @ (T, H)^T -> (n_mels, T)
            mel_bT = lax.dot_general(melw, xo[b], (((1,), (1,)), ((), ())),
                                     preferred_element_type=jnp.float32)
            o_ref[b] = mel_bT + melb


# --------------------------------- wrapper ---------------------------------------
def init_params(key, n_vocab, n_mels, hidden, n_heads, n_layers):
    H, F_, L = hidden, 4 * hidden, n_layers
    ks = jax.random.split(key, 6)

    def w(k, shape, scale=0.02):
        return scale * jax.random.normal(k, shape, dtype=jnp.float32)

    # Matmul weights pre-transposed to (in_dim, out_dim) and stored in bf16;
    # biases / layernorm params stay f32.  The attention scale 1/sqrt(hd) is
    # folded into the q columns of in_w / in_b once here (not per call).
    scale = 1.0 / math.sqrt(H // n_heads)
    in_w = w(ks[1], (L, H, 3 * H))
    in_w = in_w.at[:, :, :H].multiply(scale)
    in_b = jnp.zeros((L, 1, 3 * H), jnp.float32)
    in_b = in_b.at[:, :, :H].multiply(scale)

    # packed small per-layer params: rows = out_b, ln1_w, ln1_b, ln2_w, ln2_b, f2_b
    small = jnp.stack([jnp.zeros((L, H)), jnp.ones((L, H)), jnp.zeros((L, H)),
                       jnp.ones((L, H)), jnp.zeros((L, H)), jnp.zeros((L, H))],
                      axis=1).astype(jnp.float32)                    # (L, 6, H)

    return dict(
        emb=w(ks[0], (n_vocab, H)),
        in_w=in_w.astype(jnp.bfloat16), in_b=in_b,
        out_w=w(ks[2], (L, H, H)).astype(jnp.bfloat16),
        f1_w=w(ks[3], (L, H, F_)).astype(jnp.bfloat16),
        f1_b=jnp.zeros((L, 1, F_), jnp.float32),
        f2_w=w(ks[4], (L, F_, H)).astype(jnp.bfloat16),
        small=small,
        mel_w=w(ks[5], (n_mels, H)).astype(jnp.bfloat16),
        mel_b=jnp.zeros((n_mels, 1), jnp.float32),
    )


def _interp_linear_ncl(x, out_len):
    """F.interpolate(mode='linear', align_corners=False) on (B, C, L_in)."""
    B, C, L = x.shape
    scale = L / out_len
    j = jnp.arange(out_len, dtype=jnp.float32)
    src = jnp.clip((j + 0.5) * scale - 0.5, 0.0, L - 1)
    i0 = jnp.floor(src).astype(jnp.int32)
    i1 = jnp.minimum(i0 + 1, L - 1)
    wgt = src - i0.astype(jnp.float32)
    return x[:, :, i0] * (1.0 - wgt) + x[:, :, i1] * wgt


def _has_bf16_eup():
    """bf16 transcendentals only on v6e / v7x (v5e and earlier have no bf16 EUP)."""
    try:
        kind = jax.devices()[0].device_kind.lower()
    except Exception:
        return True
    return not any(v in kind for v in ("v2", "v3", "v4", "v5"))


def _pick_bb_and_vmem(B, T, H, F_, n_mels):
    """Choose a batch tile that fits the physical VMEM and a safe scoped limit."""
    try:
        cap = int(pltpu.get_tpu_info().vmem_capacity_bytes)
    except Exception:
        cap = 64 * 2 ** 20                       # conservative: v7x per-core VMEM
    budget = max(32 * 2 ** 20, min(int(cap * 0.75), 96 * 2 ** 20))

    bf, f4 = 2, 4
    w_layer = (H * 3 * H + H * H + 2 * H * F_) * bf      # big bf16 weights / layer
    w_small = (6 * H + 3 * H + F_) * f4                  # packed + in_b + f1_b
    io_const = n_mels * H * bf + n_mels * f4             # mel head

    def est(bb):
        acts = bb * f4 * (T * H                 # residual carry
                          + 2 * T * H           # embedded input (double-buffered)
                          + 2 * T               # kbias
                          + 3 * T * H           # qkv
                          + T * T               # per-head scores
                          + T * F_              # ffn hidden
                          + 2 * T * H           # attn / residual temporaries
                          + 2 * n_mels * T)     # output (double-buffered)
        return 2 * (w_layer + w_small) + io_const + acts + (2 << 20)

    bb = 1
    for cand in range(1, min(B, 8) + 1):        # cap bb at 8 (weight DMA well hidden)
        if B % cand == 0 and est(cand) <= budget:
            bb = cand
    return bb, budget


def text_to_mel(params, text_ids, n_heads, mel_specs_target=None):
    B, T = text_ids.shape
    H = params["emb"].shape[1]
    n_mels = params["mel_w"].shape[0]
    L = params["in_w"].shape[0]
    F_ = params["f1_w"].shape[2]

    # glue: embedding gather + key-padding-mask bias
    emb = jnp.take(params["emb"], text_ids, axis=0).astype(jnp.float32)   # (B, T, H)
    kbias = jnp.where(text_ids == PAD_ID, -1e30, 0.0).astype(jnp.float32)[:, None, :]

    bb, vmem_limit = _pick_bb_and_vmem(B, T, H, F_, n_mels)
    use_bf16_eup = _has_bf16_eup()

    layer_weights = [params["in_w"], params["out_w"], params["f1_w"], params["f2_w"],
                     params["small"], params["in_b"], params["f1_b"]]

    def layer_spec(a):
        nd = a.ndim
        # stream one layer's slice per grid step along the L axis
        return pl.BlockSpec((1,) + a.shape[1:],
                            lambda b, l, nd=nd: (l,) + (0,) * (nd - 1))

    def const_spec(a):
        nd = a.ndim
        return pl.BlockSpec(a.shape, lambda b, l, nd=nd: (0,) * nd)

    in_specs = ([pl.BlockSpec((bb, T, H), lambda b, l: (b, 0, 0)),
                 pl.BlockSpec((bb, 1, T), lambda b, l: (b, 0, 0))]
                + [layer_spec(a) for a in layer_weights]
                + [const_spec(params["mel_w"]), const_spec(params["mel_b"])])

    kernel = functools.partial(_encoder_layer_kernel, n_heads=n_heads,
                               use_bf16_eup=use_bf16_eup)
    out = pl.pallas_call(
        kernel,
        out_shape=jax.ShapeDtypeStruct((B, n_mels, T), jnp.float32),
        grid_spec=pltpu.PrefetchScalarGridSpec(
            num_scalar_prefetch=0,
            grid=(B // bb, L),
            in_specs=in_specs,
            out_specs=pl.BlockSpec((bb, n_mels, T), lambda b, l: (b, 0, 0)),
            scratch_shapes=[pltpu.VMEM((bb, T, H), jnp.float32)],   # residual carry
        ),
        compiler_params=pltpu.CompilerParams(
            dimension_semantics=("parallel", "arbitrary"),
            vmem_limit_bytes=int(vmem_limit)),
    )(emb, kbias, *layer_weights, params["mel_w"], params["mel_b"])

    mel_prediction = out                                                   # (B, n_mels, T)

    if mel_specs_target is not None:
        target_len = mel_specs_target.shape[2]
        if mel_prediction.shape[2] != target_len:
            mel_prediction = _interp_linear_ncl(mel_prediction, target_len)
        return jnp.mean(jnp.abs(mel_prediction - mel_specs_target))       # F.l1_loss (mean)
    return mel_prediction


# ----------------------------------- demo ----------------------------------------
if __name__ == "__main__":
    key = jax.random.PRNGKey(0)
    B, T = 2, 8
    hidden, n_heads, n_layers = 32, 4, 2
    n_mels = 16
    n_vocab = len(_symbols)

    params = init_params(key, n_vocab, n_mels, hidden, n_heads, n_layers)

    k_ids, k_tgt = jax.random.split(jax.random.fold_in(key, 1))
    text_ids = jax.random.randint(k_ids, (B, T), 0, n_vocab, dtype=jnp.int32)
    text_ids = text_ids.at[:, -2:].set(PAD_ID)   # exercise the key-padding mask

    # inference path: returns (B, n_mels, T)
    mel = text_to_mel(params, text_ids, n_heads)
    jax.block_until_ready(mel)
    assert mel.shape == (B, n_mels, T) and mel.dtype == jnp.float32

    # training path: interpolate to target length + L1 loss (glue in plain JAX)
    mel_target = jax.random.normal(k_tgt, (B, n_mels, 12), dtype=jnp.float32)
    loss = text_to_mel(params, text_ids, n_heads, mel_specs_target=mel_target)
    jax.block_until_ready(loss)
    assert loss.shape == ()

    print("KERNEL_OK")
</pallas_src>

<mosaic_0001>
module attributes {stable_mosaic.version = 11 : i64} {
  func.func @_encoder_layer_kernel(%arg0: i32, %arg1: i32, %arg2: memref<2x8x32xf32, #tpu.memory_space<vmem>>, %arg3: memref<2x1x8xf32, #tpu.memory_space<vmem>>, %arg4: memref<1x32x96xbf16, #tpu.memory_space<vmem>>, %arg5: memref<1x32x32xbf16, #tpu.memory_space<vmem>>, %arg6: memref<1x32x128xbf16, #tpu.memory_space<vmem>>, %arg7: memref<1x128x32xbf16, #tpu.memory_space<vmem>>, %arg8: memref<1x6x32xf32, #tpu.memory_space<vmem>>, %arg9: memref<1x1x96xf32, #tpu.memory_space<vmem>>, %arg10: memref<1x1x128xf32, #tpu.memory_space<vmem>>, %arg11: memref<16x32xbf16, #tpu.memory_space<vmem>>, %arg12: memref<16x1xf32, #tpu.memory_space<vmem>>, %arg13: memref<2x16x8xf32, #tpu.memory_space<vmem>>, %arg14: memref<2x8x32xf32, #tpu.memory_space<vmem>>) attributes {dimension_semantics = [#tpu.dimension_semantics<parallel>, #tpu.dimension_semantics<arbitrary>], iteration_bounds = array<i64: 1, 2>, scalar_prefetch = 0 : i64, scratch_operands = 1 : i64, tpu.core_type = #tpu.core_type<tc>, window_params = [{transform_indices = @transform_0, window_bounds = array<i64: 2, 8, 32>}, {transform_indices = @transform_1, window_bounds = array<i64: 2, 1, 8>}, {transform_indices = @transform_2, window_bounds = array<i64: 1, 32, 96>}, {transform_indices = @transform_3, window_bounds = array<i64: 1, 32, 32>}, {transform_indices = @transform_4, window_bounds = array<i64: 1, 32, 128>}, {transform_indices = @transform_5, window_bounds = array<i64: 1, 128, 32>}, {transform_indices = @transform_6, window_bounds = array<i64: 1, 6, 32>}, {transform_indices = @transform_7, window_bounds = array<i64: 1, 1, 96>}, {transform_indices = @transform_8, window_bounds = array<i64: 1, 1, 128>}, {pipeline_mode = #tpu.pipeline_mode<synchronous>, transform_indices = @transform_9, window_bounds = array<i64: 16, 32>}, {pipeline_mode = #tpu.pipeline_mode<synchronous>, transform_indices = @transform_10, window_bounds = array<i64: 16, 1>}, {transform_indices = @transform_11, window_bounds = array<i64: 2, 16, 8>}]} {
    %c0_i32 = arith.constant 0 : i32
    %0 = arith.cmpi eq, %arg1, %c0_i32 : i32
    %1 = arith.extui %0 : i1 to i32
    %c0_i32_0 = arith.constant 0 : i32
    %2 = arith.cmpi ne, %1, %c0_i32_0 : i32
    scf.if %2 {
      %c0_67 = arith.constant 0 : index
      %c0_68 = arith.constant 0 : index
      %c0_69 = arith.constant 0 : index
      %219 = vector.load %arg2[%c0_67, %c0_68, %c0_69] : memref<2x8x32xf32, #tpu.memory_space<vmem>>, vector<2x8x32xf32>
      %c0_70 = arith.constant 0 : index
      %c0_71 = arith.constant 0 : index
      %c0_72 = arith.constant 0 : index
      %220 = vector.load %arg14[%c0_70, %c0_71, %c0_72] : memref<2x8x32xf32, #tpu.memory_space<vmem>>, vector<2x8x32xf32>
      tpu.vector_store %arg14[%c0_70, %c0_71, %c0_72], %219 {strides = array<i32>} : memref<2x8x32xf32, #tpu.memory_space<vmem>>, vector<2x8x32xf32>,
    } else {
    }
    %c0 = arith.constant 0 : index
    %c0_1 = arith.constant 0 : index
    %c0_2 = arith.constant 0 : index
    %3 = vector.load %arg14[%c0, %c0_1, %c0_2] : memref<2x8x32xf32, #tpu.memory_space<vmem>>, vector<2x8x32xf32>
    %c0_3 = arith.constant 0 : index
    %c0_4 = arith.constant 0 : index
    %c0_5 = arith.constant 0 : index
    %4 = vector.load %arg3[%c0_3, %c0_4, %c0_5] : memref<2x1x8xf32, #tpu.memory_space<vmem>>, vector<2x1x8xf32>
    %c0_6 = arith.constant 0 : index
    %c0_7 = arith.constant 0 : index
    %c0_8 = arith.constant 0 : index
    %5 = vector.load %arg8[%c0_6, %c0_7, %c0_8] : memref<1x6x32xf32, #tpu.memory_space<vmem>>, vector<1x6x32xf32>
    %6 = vector.shape_cast %5 : vector<1x6x32xf32> to vector<6x32xf32>
    %7 = vector.extract_strided_slice %6 {offsets = [0, 0], sizes = [1, 32], strides = [1, 1]} : vector<6x32xf32> to vector<1x32xf32>
    %8 = vector.shape_cast %7 : vector<1x32xf32> to vector<32xf32>
    %9 = vector.extract_strided_slice %6 {offsets = [1, 0], sizes = [1, 32], strides = [1, 1]} : vector<6x32xf32> to vector<1x32xf32>
    %10 = vector.shape_cast %9 : vector<1x32xf32> to vector<32xf32>
    %11 = vector.extract_strided_slice %6 {offsets = [2, 0], sizes = [1, 32], strides = [1, 1]} : vector<6x32xf32> to vector<1x32xf32>
    %12 = vector.shape_cast %11 : vector<1x32xf32> to vector<32xf32>
    %13 = vector.extract_strided_slice %6 {offsets = [3, 0], sizes = [1, 32], strides = [1, 1]} : vector<6x32xf32> to vector<1x32xf32>
    %14 = vector.shape_cast %13 : vector<1x32xf32> to vector<32xf32>
    %15 = vector.extract_strided_slice %6 {offsets = [4, 0], sizes = [1, 32], strides = [1, 1]} : vector<6x32xf32> to vector<1x32xf32>
    %16 = vector.shape_cast %15 : vector<1x32xf32> to vector<32xf32>
    %17 = vector.extract_strided_slice %6 {offsets = [5, 0], sizes = [1, 32], strides = [1, 1]} : vector<6x32xf32> to vector<1x32xf32>
    %18 = vector.shape_cast %17 : vector<1x32xf32> to vector<32xf32>
    %c0_9 = arith.constant 0 : index
    %c0_10 = arith.constant 0 : index
    %c0_11 = arith.constant 0 : index
    %19 = vector.load %arg9[%c0_9, %c0_10, %c0_11] : memref<1x1x96xf32, #tpu.memory_space<vmem>>, vector<1x1x96xf32>
    %20 = vector.shape_cast %19 : vector<1x1x96xf32> to vector<1x96xf32>
    %c0_12 = arith.constant 0 : index
    %c0_13 = arith.constant 0 : index
    %c0_14 = arith.constant 0 : index
    %21 = vector.load %arg10[%c0_12, %c0_13, %c0_14] : memref<1x1x128xf32, #tpu.memory_space<vmem>>, vector<1x1x128xf32>
    %22 = vector.shape_cast %21 : vector<1x1x128xf32> to vector<1x128xf32>
    %23 = arith.truncf %3 : vector<2x8x32xf32> to vector<2x8x32xbf16>
    %c0_15 = arith.constant 0 : index
    %c0_16 = arith.constant 0 : index
    %c0_17 = arith.constant 0 : index
    %24 = vector.load %arg4[%c0_15, %c0_16, %c0_17] : memref<1x32x96xbf16, #tpu.memory_space<vmem>>, vector<1x32x96xbf16>
    %25 = vector.shape_cast %24 : vector<1x32x96xbf16> to vector<32x96xbf16>
    "tpu.trace_start"() <{level = 10 : i32, message = "bth,hc->btc"}> : () -> ()
    %cst = arith.constant dense<0.000000e+00> : vector<2x8x96xf32>
    %26 = tpu.matmul %23, %25, %cst {dimension_numbers = #tpu.dot_dimension_numbers<[2], [0], [0, 1], [1], [0, 0, 0, 1, 1, 1], [], []>} : vector<2x8x32xbf16>, vector<32x96xbf16>, vector<2x8x96xf32> -> vector<2x8x96xf32>
    "tpu.trace_stop"() : () -> ()
    %27 = vector.shape_cast %20 : vector<1x96xf32> to vector<1x1x96xf32>
    %28 = vector.broadcast %27 : vector<1x1x96xf32> to vector<2x8x96xf32>
    %29 = arith.addf %26, %28 : vector<2x8x96xf32>
    %c0_18 = arith.constant 0 : index
    %c0_19 = arith.constant 0 : index
    %c0_20 = arith.constant 0 : index
    %30 = vector.load %arg5[%c0_18, %c0_19, %c0_20] : memref<1x32x32xbf16, #tpu.memory_space<vmem>>, vector<1x32x32xbf16>
    %31 = vector.shape_cast %30 : vector<1x32x32xbf16> to vector<32x32xbf16>
    %32 = vector.extract_strided_slice %29 {offsets = [0, 0, 0], sizes = [2, 8, 8], strides = [1, 1, 1]} : vector<2x8x96xf32> to vector<2x8x8xf32>
    %33 = arith.truncf %32 : vector<2x8x8xf32> to vector<2x8x8xbf16>
    %34 = vector.extract_strided_slice %29 {offsets = [0, 0, 32], sizes = [2, 8, 8], strides = [1, 1, 1]} : vector<2x8x96xf32> to vector<2x8x8xf32>
    %35 = arith.truncf %34 : vector<2x8x8xf32> to vector<2x8x8xbf16>
    %36 = vector.extract_strided_slice %29 {offsets = [0, 0, 64], sizes = [2, 8, 8], strides = [1, 1, 1]} : vector<2x8x96xf32> to vector<2x8x8xf32>
    %37 = arith.truncf %36 : vector<2x8x8xf32> to vector<2x8x8xbf16>
    "tpu.trace_start"() <{level = 10 : i32, message = "bqd,bkd->bqk"}> : () -> ()
    %cst_21 = arith.constant dense<0.000000e+00> : vector<2x8x8xf32>
    %38 = tpu.matmul %33, %35, %cst_21 {dimension_numbers = #tpu.dot_dimension_numbers<[2], [2], [1], [1], [0, 0, 0, 1, 1, 1], [0], [0]>} : vector<2x8x8xbf16>, vector<2x8x8xbf16>, vector<2x8x8xf32> -> vector<2x8x8xf32>
    "tpu.trace_stop"() : () -> ()
    %39 = vector.broadcast %4 : vector<2x1x8xf32> to vector<2x8x8xf32>
    %40 = arith.addf %38, %39 : vector<2x8x8xf32>
    %cst_22 = arith.constant dense<0xFF800000> : vector<2x8xf32>
    %41 = vector.multi_reduction <maximumf>, %40, %cst_22 [2] : vector<2x8x8xf32> to vector<2x8xf32>
    %42 = vector.shape_cast %41 : vector<2x8xf32> to vector<2x8x1xf32>
    %43 = vector.broadcast %42 : vector<2x8x1xf32> to vector<2x8x8xf32>
    %44 = arith.subf %40, %43 : vector<2x8x8xf32>
    %45 = arith.truncf %44 : vector<2x8x8xf32> to vector<2x8x8xbf16>
    %46 = math.exp %45 : vector<2x8x8xbf16>
    %47 = arith.extf %46 : vector<2x8x8xbf16> to vector<2x8x8xf32>
    %cst_23 = arith.constant dense<0.000000e+00> : vector<2x8xf32>
    %48 = vector.multi_reduction <add>, %47, %cst_23 [2] : vector<2x8x8xf32> to vector<2x8xf32>
    %49 = vector.shape_cast %48 : vector<2x8xf32> to vector<2x8x1xf32>
    %50 = tpu.reciprocal %49 {approx = true} : vector<2x8x1xf32> -> vector<2x8x1xf32>
    "tpu.trace_start"() <{level = 10 : i32, message = "bqk,bkd->bqd"}> : () -> ()
    %cst_24 = arith.constant dense<0.000000e+00> : vector<2x8x8xf32>
    %51 = tpu.matmul %46, %37, %cst_24 {dimension_numbers = #tpu.dot_dimension_numbers<[2], [1], [1], [2], [0, 0, 0, 1, 1, 2], [0], [0]>} : vector<2x8x8xbf16>, vector<2x8x8xbf16>, vector<2x8x8xf32> -> vector<2x8x8xf32>
    "tpu.trace_stop"() : () -> ()
    %52 = vector.broadcast %50 : vector<2x8x1xf32> to vector<2x8x8xf32>
    %53 = arith.mulf %51, %52 : vector<2x8x8xf32>
    %54 = arith.truncf %53 : vector<2x8x8xf32> to vector<2x8x8xbf16>
    %55 = vector.extract_strided_slice %31 {offsets = [0, 0], sizes = [8, 32], strides = [1, 1]} : vector<32x32xbf16> to vector<8x32xbf16>
    "tpu.trace_start"() <{level = 10 : i32, message = "bqd,dh->bqh"}> : () -> ()
    %cst_25 = arith.constant dense<0.000000e+00> : vector<2x8x32xf32>
    %56 = tpu.matmul %54, %55, %cst_25 {dimension_numbers = #tpu.dot_dimension_numbers<[2], [0], [0, 1], [1], [0, 0, 0, 1, 1, 1], [], []>} : vector<2x8x8xbf16>, vector<8x32xbf16>, vector<2x8x32xf32> -> vector<2x8x32xf32>
    "tpu.trace_stop"() : () -> ()
    %57 = vector.extract_strided_slice %29 {offsets = [0, 0, 8], sizes = [2, 8, 8], strides = [1, 1, 1]} : vector<2x8x96xf32> to vector<2x8x8xf32>
    %58 = arith.truncf %57 : vector<2x8x8xf32> to vector<2x8x8xbf16>
    %59 = vector.extract_strided_slice %29 {offsets = [0, 0, 40], sizes = [2, 8, 8], strides = [1, 1, 1]} : vector<2x8x96xf32> to vector<2x8x8xf32>
    %60 = arith.truncf %59 : vector<2x8x8xf32> to vector<2x8x8xbf16>
    %61 = vector.extract_strided_slice %29 {offsets = [0, 0, 72], sizes = [2, 8, 8], strides = [1, 1, 1]} : vector<2x8x96xf32> to vector<2x8x8xf32>
    %62 = arith.truncf %61 : vector<2x8x8xf32> to vector<2x8x8xbf16>
    "tpu.trace_start"() <{level = 10 : i32, message = "bqd,bkd->bqk"}> : () -> ()
    %cst_26 = arith.constant dense<0.000000e+00> : vector<2x8x8xf32>
    %63 = tpu.matmul %58, %60, %cst_26 {dimension_numbers = #tpu.dot_dimension_numbers<[2], [2], [1], [1], [0, 0, 0, 1, 1, 1], [0], [0]>} : vector<2x8x8xbf16>, vector<2x8x8xbf16>, vector<2x8x8xf32> -> vector<2x8x8xf32>
    "tpu.trace_stop"() : () -> ()
    %64 = vector.broadcast %4 : vector<2x1x8xf32> to vector<2x8x8xf32>
    %65 = arith.addf %63, %64 : vector<2x8x8xf32>
    %cst_27 = arith.constant dense<0xFF800000> : vector<2x8xf32>
    %66 = vector.multi_reduction <maximumf>, %65, %cst_27 [2] : vector<2x8x8xf32> to vector<2x8xf32>
    %67 = vector.shape_cast %66 : vector<2x8xf32> to vector<2x8x1xf32>
    %68 = vector.broadcast %67 : vector<2x8x1xf32> to vector<2x8x8xf32>
    %69 = arith.subf %65, %68 : vector<2x8x8xf32>
    %70 = arith.truncf %69 : vector<2x8x8xf32> to vector<2x8x8xbf16>
    %71 = math.exp %70 : vector<2x8x8xbf16>
    %72 = arith.extf %71 : vector<2x8x8xbf16> to vector<2x8x8xf32>
    %cst_28 = arith.constant dense<0.000000e+00> : vector<2x8xf32>
    %73 = vector.multi_reduction <add>, %72, %cst_28 [2] : vector<2x8x8xf32> to vector<2x8xf32>
    %74 = vector.shape_cast %73 : vector<2x8xf32> to vector<2x8x1xf32>
    %75 = tpu.reciprocal %74 {approx = true} : vector<2x8x1xf32> -> vector<2x8x1xf32>
    "tpu.trace_start"() <{level = 10 : i32, message = "bqk,bkd->bqd"}> : () -> ()
    %cst_29 = arith.constant dense<0.000000e+00> : vector<2x8x8xf32>
    %76 = tpu.matmul %71, %62, %cst_29 {dimension_numbers = #tpu.dot_dimension_numbers<[2], [1], [1], [2], [0, 0, 0, 1, 1, 2], [0], [0]>} : vector<2x8x8xbf16>, vector<2x8x8xbf16>, vector<2x8x8xf32> -> vector<2x8x8xf32>
    "tpu.trace_stop"() : () -> ()
    %77 = vector.broadcast %75 : vector<2x8x1xf32> to vector<2x8x8xf32>
    %78 = arith.mulf %76, %77 : vector<2x8x8xf32>
    %79 = arith.truncf %78 : vector<2x8x8xf32> to vector<2x8x8xbf16>
    %80 = vector.extract_strided_slice %31 {offsets = [8, 0], sizes = [8, 32], strides = [1, 1]} : vector<32x32xbf16> to vector<8x32xbf16>
    "tpu.trace_start"() <{level = 10 : i32, message = "bqd,dh->bqh"}> : () -> ()
    %cst_30 = arith.constant dense<0.000000e+00> : vector<2x8x32xf32>
    %81 = tpu.matmul %79, %80, %cst_30 {dimension_numbers = #tpu.dot_dimension_numbers<[2], [0], [0, 1], [1], [0, 0, 0, 1, 1, 1], [], []>} : vector<2x8x8xbf16>, vector<8x32xbf16>, vector<2x8x32xf32> -> vector<2x8x32xf32>
    "tpu.trace_stop"() : () -> ()
    %82 = arith.addf %56, %81 : vector<2x8x32xf32>
    %83 = vector.extract_strided_slice %29 {offsets = [0, 0, 16], sizes = [2, 8, 8], strides = [1, 1, 1]} : vector<2x8x96xf32> to vector<2x8x8xf32>
    %84 = arith.truncf %83 : vector<2x8x8xf32> to vector<2x8x8xbf16>
    %85 = vector.extract_strided_slice %29 {offsets = [0, 0, 48], sizes = [2, 8, 8], strides = [1, 1, 1]} : vector<2x8x96xf32> to vector<2x8x8xf32>
    %86 = arith.truncf %85 : vector<2x8x8xf32> to vector<2x8x8xbf16>
    %87 = vector.extract_strided_slice %29 {offsets = [0, 0, 80], sizes = [2, 8, 8], strides = [1, 1, 1]} : vector<2x8x96xf32> to vector<2x8x8xf32>
    %88 = arith.truncf %87 : vector<2x8x8xf32> to vector<2x8x8xbf16>
    "tpu.trace_start"() <{level = 10 : i32, message = "bqd,bkd->bqk"}> : () -> ()
    %cst_31 = arith.constant dense<0.000000e+00> : vector<2x8x8xf32>
    %89 = tpu.matmul %84, %86, %cst_31 {dimension_numbers = #tpu.dot_dimension_numbers<[2], [2], [1], [1], [0, 0, 0, 1, 1, 1], [0], [0]>} : vector<2x8x8xbf16>, vector<2x8x8xbf16>, vector<2x8x8xf32> -> vector<2x8x8xf32>
    "tpu.trace_stop"() : () -> ()
    %90 = vector.broadcast %4 : vector<2x1x8xf32> to vector<2x8x8xf32>
    %91 = arith.addf %89, %90 : vector<2x8x8xf32>
    %cst_32 = arith.constant dense<0xFF800000> : vector<2x8xf32>
    %92 = vector.multi_reduction <maximumf>, %91, %cst_32 [2] : vector<2x8x8xf32> to vector<2x8xf32>
    %93 = vector.shape_cast %92 : vector<2x8xf32> to vector<2x8x1xf32>
    %94 = vector.broadcast %93 : vector<2x8x1xf32> to vector<2x8x8xf32>
    %95 = arith.subf %91, %94 : vector<2x8x8xf32>
    %96 = arith.truncf %95 : vector<2x8x8xf32> to vector<2x8x8xbf16>
    %97 = math.exp %96 : vector<2x8x8xbf16>
    %98 = arith.extf %97 : vector<2x8x8xbf16> to vector<2x8x8xf32>
    %cst_33 = arith.constant dense<0.000000e+00> : vector<2x8xf32>
    %99 = vector.multi_reduction <add>, %98, %cst_33 [2] : vector<2x8x8xf32> to vector<2x8xf32>
    %100 = vector.shape_cast %99 : vector<2x8xf32> to vector<2x8x1xf32>
    %101 = tpu.reciprocal %100 {approx = true} : vector<2x8x1xf32> -> vector<2x8x1xf32>
    "tpu.trace_start"() <{level = 10 : i32, message = "bqk,bkd->bqd"}> : () -> ()
    %cst_34 = arith.constant dense<0.000000e+00> : vector<2x8x8xf32>
    %102 = tpu.matmul %97, %88, %cst_34 {dimension_numbers = #tpu.dot_dimension_numbers<[2], [1], [1], [2], [0, 0, 0, 1, 1, 2], [0], [0]>} : vector<2x8x8xbf16>, vector<2x8x8xbf16>, vector<2x8x8xf32> -> vector<2x8x8xf32>
    "tpu.trace_stop"() : () -> ()
    %103 = vector.broadcast %101 : vector<2x8x1xf32> to vector<2x8x8xf32>
    %104 = arith.mulf %102, %103 : vector<2x8x8xf32>
    %105 = arith.truncf %104 : vector<2x8x8xf32> to vector<2x8x8xbf16>
    %106 = vector.extract_strided_slice %31 {offsets = [16, 0], sizes = [8, 32], strides = [1, 1]} : vector<32x32xbf16> to vector<8x32xbf16>
    "tpu.trace_start"() <{level = 10 : i32, message = "bqd,dh->bqh"}> : () -> ()
    %cst_35 = arith.constant dense<0.000000e+00> : vector<2x8x32xf32>
    %107 = tpu.matmul %105, %106, %cst_35 {dimension_numbers = #tpu.dot_dimension_numbers<[2], [0], [0, 1], [1], [0, 0, 0, 1, 1, 1], [], []>} : vector<2x8x8xbf16>, vector<8x32xbf16>, vector<2x8x32xf32> -> vector<2x8x32xf32>
    "tpu.trace_stop"() : () -> ()
    %108 = arith.addf %82, %107 : vector<2x8x32xf32>
    %109 = vector.extract_strided_slice %29 {offsets = [0, 0, 24], sizes = [2, 8, 8], strides = [1, 1, 1]} : vector<2x8x96xf32> to vector<2x8x8xf32>
    %110 = arith.truncf %109 : vector<2x8x8xf32> to vector<2x8x8xbf16>
    %111 = vector.extract_strided_slice %29 {offsets = [0, 0, 56], sizes = [2, 8, 8], strides = [1, 1, 1]} : vector<2x8x96xf32> to vector<2x8x8xf32>
    %112 = arith.truncf %111 : vector<2x8x8xf32> to vector<2x8x8xbf16>
    %113 = vector.extract_strided_slice %29 {offsets = [0, 0, 88], sizes = [2, 8, 8], strides = [1, 1, 1]} : vector<2x8x96xf32> to vector<2x8x8xf32>
    %114 = arith.truncf %113 : vector<2x8x8xf32> to vector<2x8x8xbf16>
    "tpu.trace_start"() <{level = 10 : i32, message = "bqd,bkd->bqk"}> : () -> ()
    %cst_36 = arith.constant dense<0.000000e+00> : vector<2x8x8xf32>
    %115 = tpu.matmul %110, %112, %cst_36 {dimension_numbers = #tpu.dot_dimension_numbers<[2], [2], [1], [1], [0, 0, 0, 1, 1, 1], [0], [0]>} : vector<2x8x8xbf16>, vector<2x8x8xbf16>, vector<2x8x8xf32> -> vector<2x8x8xf32>
    "tpu.trace_stop"() : () -> ()
    %116 = vector.broadcast %4 : vector<2x1x8xf32> to vector<2x8x8xf32>
    %117 = arith.addf %115, %116 : vector<2x8x8xf32>
    %cst_37 = arith.constant dense<0xFF800000> : vector<2x8xf32>
    %118 = vector.multi_reduction <maximumf>, %117, %cst_37 [2] : vector<2x8x8xf32> to vector<2x8xf32>
    %119 = vector.shape_cast %118 : vector<2x8xf32> to vector<2x8x1xf32>
    %120 = vector.broadcast %119 : vector<2x8x1xf32> to vector<2x8x8xf32>
    %121 = arith.subf %117, %120 : vector<2x8x8xf32>
    %122 = arith.truncf %121 : vector<2x8x8xf32> to vector<2x8x8xbf16>
    %123 = math.exp %122 : vector<2x8x8xbf16>
    %124 = arith.extf %123 : vector<2x8x8xbf16> to vector<2x8x8xf32>
    %cst_38 = arith.constant dense<0.000000e+00> : vector<2x8xf32>
    %125 = vector.multi_reduction <add>, %124, %cst_38 [2] : vector<2x8x8xf32> to vector<2x8xf32>
    %126 = vector.shape_cast %125 : vector<2x8xf32> to vector<2x8x1xf32>
    %127 = tpu.reciprocal %126 {approx = true} : vector<2x8x1xf32> -> vector<2x8x1xf32>
    "tpu.trace_start"() <{level = 10 : i32, message = "bqk,bkd->bqd"}> : () -> ()
    %cst_39 = arith.constant dense<0.000000e+00> : vector<2x8x8xf32>
    %128 = tpu.matmul %123, %114, %cst_39 {dimension_numbers = #tpu.dot_dimension_numbers<[2], [1], [1], [2], [0, 0, 0, 1, 1, 2], [0], [0]>} : vector<2x8x8xbf16>, vector<2x8x8xbf16>, vector<2x8x8xf32> -> vector<2x8x8xf32>
    "tpu.trace_stop"() : () -> ()
    %129 = vector.broadcast %127 : vector<2x8x1xf32> to vector<2x8x8xf32>
    %130 = arith.mulf %128, %129 : vector<2x8x8xf32>
    %131 = arith.truncf %130 : vector<2x8x8xf32> to vector<2x8x8xbf16>
    %132 = vector.extract_strided_slice %31 {offsets = [24, 0], sizes = [8, 32], strides = [1, 1]} : vector<32x32xbf16> to vector<8x32xbf16>
    "tpu.trace_start"() <{level = 10 : i32, message = "bqd,dh->bqh"}> : () -> ()
    %cst_40 = arith.constant dense<0.000000e+00> : vector<2x8x32xf32>
    %133 = tpu.matmul %131, %132, %cst_40 {dimension_numbers = #tpu.dot_dimension_numbers<[2], [0], [0, 1], [1], [0, 0, 0, 1, 1, 1], [], []>} : vector<2x8x8xbf16>, vector<8x32xbf16>, vector<2x8x32xf32> -> vector<2x8x32xf32>
    "tpu.trace_stop"() : () -> ()
    %134 = arith.addf %108, %133 : vector<2x8x32xf32>
    %135 = vector.shape_cast %8 : vector<32xf32> to vector<1x1x32xf32>
    %136 = vector.broadcast %135 : vector<1x1x32xf32> to vector<2x8x32xf32>
    %137 = arith.addf %134, %136 : vector<2x8x32xf32>
    %138 = arith.addf %3, %137 : vector<2x8x32xf32>
    %cst_41 = arith.constant dense<0.000000e+00> : vector<2x8xf32>
    %139 = vector.multi_reduction <add>, %138, %cst_41 [2] : vector<2x8x32xf32> to vector<2x8xf32>
    %140 = vector.shape_cast %139 : vector<2x8xf32> to vector<2x8x1xf32>
    %cst_42 = arith.constant 3.200000e+01 : f32
    %141 = vector.broadcast %cst_42 : f32 to vector<2x8x1xf32>
    %142 = arith.divf %140, %141 : vector<2x8x1xf32>
    %143 = vector.broadcast %142 : vector<2x8x1xf32> to vector<2x8x32xf32>
    %144 = arith.subf %138, %143 : vector<2x8x32xf32>
    %145 = arith.mulf %144, %144 : vector<2x8x32xf32>
    %cst_43 = arith.constant dense<0.000000e+00> : vector<2x8xf32>
    %146 = vector.multi_reduction <add>, %145, %cst_43 [2] : vector<2x8x32xf32> to vector<2x8xf32>
    %147 = vector.shape_cast %146 : vector<2x8xf32> to vector<2x8x1xf32>
    %cst_44 = arith.constant 3.200000e+01 : f32
    %148 = vector.broadcast %cst_44 : f32 to vector<2x8x1xf32>
    %149 = arith.divf %147, %148 : vector<2x8x1xf32>
    %150 = vector.broadcast %142 : vector<2x8x1xf32> to vector<2x8x32xf32>
    %151 = arith.subf %138, %150 : vector<2x8x32xf32>
    %cst_45 = arith.constant 9.99999974E-6 : f32
    %152 = vector.broadcast %cst_45 : f32 to vector<2x8x1xf32>
    %153 = arith.addf %149, %152 : vector<2x8x1xf32>
    %154 = math.rsqrt %153 : vector<2x8x1xf32>
    %155 = vector.broadcast %154 : vector<2x8x1xf32> to vector<2x8x32xf32>
    %156 = arith.mulf %151, %155 : vector<2x8x32xf32>
    %157 = vector.shape_cast %10 : vector<32xf32> to vector<1x1x32xf32>
    %158 = vector.broadcast %157 : vector<1x1x32xf32> to vector<2x8x32xf32>
    %159 = arith.mulf %156, %158 : vector<2x8x32xf32>
    %160 = vector.shape_cast %12 : vector<32xf32> to vector<1x1x32xf32>
    %161 = vector.broadcast %160 : vector<1x1x32xf32> to vector<2x8x32xf32>
    %162 = arith.addf %159, %161 : vector<2x8x32xf32>
    %163 = arith.truncf %162 : vector<2x8x32xf32> to vector<2x8x32xbf16>
    %c0_46 = arith.constant 0 : index
    %c0_47 = arith.constant 0 : index
    %c0_48 = arith.constant 0 : index
    %164 = vector.load %arg6[%c0_46, %c0_47, %c0_48] : memref<1x32x128xbf16, #tpu.memory_space<vmem>>, vector<1x32x128xbf16>
    %165 = vector.shape_cast %164 : vector<1x32x128xbf16> to vector<32x128xbf16>
    "tpu.trace_start"() <{level = 10 : i32, message = "bth,hf->btf"}> : () -> ()
    %cst_49 = arith.constant dense<0.000000e+00> : vector<2x8x128xf32>
    %166 = tpu.matmul %163, %165, %cst_49 {dimension_numbers = #tpu.dot_dimension_numbers<[2], [0], [0, 1], [1], [0, 0, 0, 1, 1, 1], [], []>} : vector<2x8x32xbf16>, vector<32x128xbf16>, vector<2x8x128xf32> -> vector<2x8x128xf32>
    "tpu.trace_stop"() : () -> ()
    %167 = vector.shape_cast %22 : vector<1x128xf32> to vector<1x1x128xf32>
    %168 = vector.broadcast %167 : vector<1x1x128xf32> to vector<2x8x128xf32>
    %169 = arith.addf %166, %168 : vector<2x8x128xf32>
    %170 = arith.truncf %169 : vector<2x8x128xf32> to vector<2x8x128xbf16>
    %cst_50 = arith.constant 5.000000e-01 : bf16
    %171 = vector.broadcast %cst_50 : bf16 to vector<2x8x128xbf16>
    %172 = arith.mulf %171, %170 : vector<2x8x128xbf16>
    %cst_51 = arith.constant 4.467770e-02 : bf16
    %173 = vector.broadcast %cst_51 : bf16 to vector<2x8x128xbf16>
    %174 = arith.mulf %173, %170 : vector<2x8x128xbf16>
    %175 = arith.mulf %174, %170 : vector<2x8x128xbf16>
    %176 = arith.mulf %175, %170 : vector<2x8x128xbf16>
    %177 = arith.addf %170, %176 : vector<2x8x128xbf16>
    %cst_52 = arith.constant 7.968750e-01 : bf16
    %178 = vector.broadcast %cst_52 : bf16 to vector<2x8x128xbf16>
    %179 = arith.mulf %178, %177 : vector<2x8x128xbf16>
    %180 = math.tanh %179 : vector<2x8x128xbf16>
    %cst_53 = arith.constant 1.000000e+00 : bf16
    %181 = vector.broadcast %cst_53 : bf16 to vector<2x8x128xbf16>
    %182 = arith.addf %181, %180 : vector<2x8x128xbf16>
    %183 = arith.mulf %172, %182 : vector<2x8x128xbf16>
    %c0_54 = arith.constant 0 : index
    %c0_55 = arith.constant 0 : index
    %c0_56 = arith.constant 0 : index
    %184 = vector.load %arg7[%c0_54, %c0_55, %c0_56] : memref<1x128x32xbf16, #tpu.memory_space<vmem>>, vector<1x128x32xbf16>
    %185 = vector.shape_cast %184 : vector<1x128x32xbf16> to vector<128x32xbf16>
    "tpu.trace_start"() <{level = 10 : i32, message = "btf,fh->bth"}> : () -> ()
    %cst_57 = arith.constant dense<0.000000e+00> : vector<2x8x32xf32>
    %186 = tpu.matmul %183, %185, %cst_57 {dimension_numbers = #tpu.dot_dimension_numbers<[2], [0], [0, 1], [1], [0, 0, 0, 1, 1, 1], [], []>} : vector<2x8x128xbf16>, vector<128x32xbf16>, vector<2x8x32xf32> -> vector<2x8x32xf32>
    "tpu.trace_stop"() : () -> ()
    %187 = vector.shape_cast %18 : vector<32xf32> to vector<1x1x32xf32>
    %188 = vector.broadcast %187 : vector<1x1x32xf32> to vector<2x8x32xf32>
    %189 = arith.addf %186, %188 : vector<2x8x32xf32>
    %190 = arith.addf %162, %189 : vector<2x8x32xf32>
    %cst_58 = arith.constant dense<0.000000e+00> : vector<2x8xf32>
    %191 = vector.multi_reduction <add>, %190, %cst_58 [2] : vector<2x8x32xf32> to vector<2x8xf32>
    %192 = vector.shape_cast %191 : vector<2x8xf32> to vector<2x8x1xf32>
    %cst_59 = arith.constant 3.200000e+01 : f32
    %193 = vector.broadcast %cst_59 : f32 to vector<2x8x1xf32>
    %194 = arith.divf %192, %193 : vector<2x8x1xf32>
    %195 = vector.broadcast %194 : vector<2x8x1xf32> to vector<2x8x32xf32>
    %196 = arith.subf %190, %195 : vector<2x8x32xf32>
    %197 = arith.mulf %196, %196 : vector<2x8x32xf32>
    %cst_60 = arith.constant dense<0.000000e+00> : vector<2x8xf32>
    %198 = vector.multi_reduction <add>, %197, %cst_60 [2] : vector<2x8x32xf32> to vector<2x8xf32>
    %199 = vector.shape_cast %198 : vector<2x8xf32> to vector<2x8x1xf32>
    %cst_61 = arith.constant 3.200000e+01 : f32
    %200 = vector.broadcast %cst_61 : f32 to vector<2x8x1xf32>
    %201 = arith.divf %199, %200 : vector<2x8x1xf32>
    %202 = vector.broadcast %194 : vector<2x8x1xf32> to vector<2x8x32xf32>
    %203 = arith.subf %190, %202 : vector<2x8x32xf32>
    %cst_62 = arith.constant 9.99999974E-6 : f32
    %204 = vector.broadcast %cst_62 : f32 to vector<2x8x1xf32>
    %205 = arith.addf %201, %204 : vector<2x8x1xf32>
    %206 = math.rsqrt %205 : vector<2x8x1xf32>
    %207 = vector.broadcast %206 : vector<2x8x1xf32> to vector<2x8x32xf32>
    %208 = arith.mulf %203, %207 : vector<2x8x32xf32>
    %209 = vector.shape_cast %14 : vector<32xf32> to vector<1x1x32xf32>
    %210 = vector.broadcast %209 : vector<1x1x32xf32> to vector<2x8x32xf32>
    %211 = arith.mulf %208, %210 : vector<2x8x32xf32>
    %212 = vector.shape_cast %16 : vector<32xf32> to vector<1x1x32xf32>
    %213 = vector.broadcast %212 : vector<1x1x32xf32> to vector<2x8x32xf32>
    %214 = arith.addf %211, %213 : vector<2x8x32xf32>
    %c0_63 = arith.constant 0 : index
    %c0_64 = arith.constant 0 : index
    %c0_65 = arith.constant 0 : index
    %215 = vector.load %arg14[%c0_63, %c0_64, %c0_65] : memref<2x8x32xf32, #tpu.memory_space<vmem>>, vector<2x8x32xf32>
    tpu.vector_store %arg14[%c0_63, %c0_64, %c0_65], %214 {strides = array<i32>} : memref<2x8x32xf32, #tpu.memory_space<vmem>>, vector<2x8x32xf32>,
    %c1_i32 = arith.constant 1 : i32
    %216 = arith.cmpi eq, %arg1, %c1_i32 : i32
    %217 = arith.extui %216 : i1 to i32
    %c0_i32_66 = arith.constant 0 : i32
    %218 = arith.cmpi ne, %217, %c0_i32_66 : i32
    scf.if %218 {
      %c0_67 = arith.constant 0 : index
      %c0_68 = arith.constant 0 : index
      %219 = vector.load %arg11[%c0_67, %c0_68] : memref<16x32xbf16, #tpu.memory_space<vmem>>, vector<16x32xbf16>
      %c0_69 = arith.constant 0 : index
      %c0_70 = arith.constant 0 : index
      %220 = vector.load %arg12[%c0_69, %c0_70] : memref<16x1xf32, #tpu.memory_space<vmem>>, vector<16x1xf32>
      %221 = arith.truncf %214 : vector<2x8x32xf32> to vector<2x8x32xbf16>
      %222 = vector.extract_strided_slice %221 {offsets = [0, 0, 0], sizes = [1, 8, 32], strides = [1, 1, 1]} : vector<2x8x32xbf16> to vector<1x8x32xbf16>
      %223 = vector.shape_cast %222 : vector<1x8x32xbf16> to vector<8x32xbf16>
      %cst_71 = arith.constant dense<0.000000e+00> : vector<16x8xf32>
      %224 = tpu.matmul %219, %223, %cst_71 {dimension_numbers = #tpu.dot_dimension_numbers<[1], [1], [0], [0], [0, 0, 1, 0], [], []>} : vector<16x32xbf16>, vector<8x32xbf16>, vector<16x8xf32> -> vector<16x8xf32>
      %225 = vector.broadcast %220 : vector<16x1xf32> to vector<16x8xf32>
      %226 = arith.addf %224, %225 : vector<16x8xf32>
      %c0_72 = arith.constant 0 : index
      %c0_73 = arith.constant 0 : index
      %c0_74 = arith.constant 0 : index
      %227 = vector.load %arg13[%c0_72, %c0_73, %c0_74] : memref<2x16x8xf32, #tpu.memory_space<vmem>>, vector<1x16x8xf32>
      %228 = vector.shape_cast %227 : vector<1x16x8xf32> to vector<16x8xf32>
      %229 = vector.shape_cast %226 : vector<16x8xf32> to vector<1x16x8xf32>
      tpu.vector_store %arg13[%c0_72, %c0_73, %c0_74], %229 {strides = array<i32>} : memref<2x16x8xf32, #tpu.memory_space<vmem>>, vector<1x16x8xf32>,
      %230 = vector.extract_strided_slice %221 {offsets = [1, 0, 0], sizes = [1, 8, 32], strides = [1, 1, 1]} : vector<2x8x32xbf16> to vector<1x8x32xbf16>
      %231 = vector.shape_cast %230 : vector<1x8x32xbf16> to vector<8x32xbf16>
      %cst_75 = arith.constant dense<0.000000e+00> : vector<16x8xf32>
      %232 = tpu.matmul %219, %231, %cst_75 {dimension_numbers = #tpu.dot_dimension_numbers<[1], [1], [0], [0], [0, 0, 1, 0], [], []>} : vector<16x32xbf16>, vector<8x32xbf16>, vector<16x8xf32> -> vector<16x8xf32>
      %233 = vector.broadcast %220 : vector<16x1xf32> to vector<16x8xf32>
      %234 = arith.addf %232, %233 : vector<16x8xf32>
      %c1 = arith.constant 1 : index
      %c0_76 = arith.constant 0 : index
      %c0_77 = arith.constant 0 : index
      %235 = vector.load %arg13[%c1, %c0_76, %c0_77] : memref<2x16x8xf32, #tpu.memory_space<vmem>>, vector<1x16x8xf32>
      %236 = vector.shape_cast %235 : vector<1x16x8xf32> to vector<16x8xf32>
      %237 = vector.shape_cast %234 : vector<16x8xf32> to vector<1x16x8xf32>
      tpu.vector_store %arg13[%c1, %c0_76, %c0_77], %237 {strides = array<i32>} : memref<2x16x8xf32, #tpu.memory_space<vmem>>, vector<1x16x8xf32>,
    } else {
    }
    return
  }
  func.func @transform_0(%arg0: i32, %arg1: i32) -> (i32, i32, i32) {
    %c0_i32 = arith.constant 0 : i32
    %c0_i32_0 = arith.constant 0 : i32
    %c0_i32_1 = arith.constant 0 : i32
    return %arg0, %c0_i32, %c0_i32_0 : i32, i32, i32
  }
  func.func @transform_1(%arg0: i32, %arg1: i32) -> (i32, i32, i32) {
    %c0_i32 = arith.constant 0 : i32
    %c0_i32_0 = arith.constant 0 : i32
    %c0_i32_1 = arith.constant 0 : i32
    return %arg0, %c0_i32, %c0_i32_0 : i32, i32, i32
  }
  func.func @transform_2(%arg0: i32, %arg1: i32) -> (i32, i32, i32) {
    %c0_i32 = arith.constant 0 : i32
    %c0_i32_0 = arith.constant 0 : i32
    %c0_i32_1 = arith.constant 0 : i32
    return %arg1, %c0_i32, %c0_i32_0 : i32, i32, i32
  }
  func.func @transform_3(%arg0: i32, %arg1: i32) -> (i32, i32, i32) {
    %c0_i32 = arith.constant 0 : i32
    %c0_i32_0 = arith.constant 0 : i32
    %c0_i32_1 = arith.constant 0 : i32
    return %arg1, %c0_i32, %c0_i32_0 : i32, i32, i32
  }
  func.func @transform_4(%arg0: i32, %arg1: i32) -> (i32, i32, i32) {
    %c0_i32 = arith.constant 0 : i32
    %c0_i32_0 = arith.constant 0 : i32
    %c0_i32_1 = arith.constant 0 : i32
    return %arg1, %c0_i32, %c0_i32_0 : i32, i32, i32
  }
  func.func @transform_5(%arg0: i32, %arg1: i32) -> (i32, i32, i32) {
    %c0_i32 = arith.constant 0 : i32
    %c0_i32_0 = arith.constant 0 : i32
    %c0_i32_1 = arith.constant 0 : i32
    return %arg1, %c0_i32, %c0_i32_0 : i32, i32, i32
  }
  func.func @transform_6(%arg0: i32, %arg1: i32) -> (i32, i32, i32) {
    %c0_i32 = arith.constant 0 : i32
    %c0_i32_0 = arith.constant 0 : i32
    %c0_i32_1 = arith.constant 0 : i32
    return %arg1, %c0_i32, %c0_i32_0 : i32, i32, i32
  }
  func.func @transform_7(%arg0: i32, %arg1: i32) -> (i32, i32, i32) {
    %c0_i32 = arith.constant 0 : i32
    %c0_i32_0 = arith.constant 0 : i32
    %c0_i32_1 = arith.constant 0 : i32
    return %arg1, %c0_i32, %c0_i32_0 : i32, i32, i32
  }
  func.func @transform_8(%arg0: i32, %arg1: i32) -> (i32, i32, i32) {
    %c0_i32 = arith.constant 0 : i32
    %c0_i32_0 = arith.constant 0 : i32
    %c0_i32_1 = arith.constant 0 : i32
    return %arg1, %c0_i32, %c0_i32_0 : i32, i32, i32
  }
  func.func @transform_9(%arg0: i32, %arg1: i32) -> (i32, i32) {
    %c0_i32 = arith.constant 0 : i32
    %c0_i32_0 = arith.constant 0 : i32
    %c0_i32_1 = arith.constant 0 : i32
    return %c0_i32, %c0_i32_0 : i32, i32
  }
  func.func @transform_10(%arg0: i32, %arg1: i32) -> (i32, i32) {
    %c0_i32 = arith.constant 0 : i32
    %c0_i32_0 = arith.constant 0 : i32
    %c0_i32_1 = arith.constant 0 : i32
    return %c0_i32, %c0_i32_0 : i32, i32
  }
  func.func @transform_11(%arg0: i32, %arg1: i32) -> (i32, i32, i32) {
    %c0_i32 = arith.constant 0 : i32
    %c0_i32_0 = arith.constant 0 : i32
    %c0_i32_1 = arith.constant 0 : i32
    return %arg0, %c0_i32, %c0_i32_0 : i32, i32, i32
  }
}

</mosaic_0001>

<bundles_post_ra>
// kernel: tpu_custom_call.1
= control target key start
LH: loop header
LB: loop body
LE: loop exit
PB: predicated region body
PF: predicated region fallthrough
CT: control target
= control target key end

     0   :  { %s2858_s17 = smov 0   ;;  %s2860_s18 = smov 0   ;;  %s3226_s0 = inlined_call_operand.vmem [shape: f32[2,8,32], index: 0, kind: input, shape index: {}]   ;;  %s3227_s1 = inlined_call_operand.vmem [shape: f32[2,1,8], index: 1, kind: input, shape index: {}]   ;;  %s3228_s2 = inlined_call_operand.vmem [shape: bf16[2,32,96], index: 2, kind: input, shape index: {}]   ;;  %s3229_s3 = inlined_call_operand.vmem [shape: bf16[2,32,32], index: 3, kind: input, shape index: {}]   ;;  %s3230_s4 = inlined_call_operand.vmem [shape: bf16[2,32,128], index: 4, kind: input, shape index: {}]   ;;  %s3231_s5 = inlined_call_operand.vmem [shape: bf16[2,128,32], index: 5, kind: input, shape index: {}]   ;;  %s3232_s6 = inlined_call_operand.vmem [shape: f32[2,6,32], index: 6, kind: input, shape index: {}]   ;;  %s3233_s7 = inlined_call_operand.vmem [shape: f32[2,1,96], index: 7, kind: input, shape index: {}]   ;;  %s3234_s8 = inlined_call_operand.vmem [shape: f32[2,1,128], index: 8, kind: input, shape index: {}]   ;;  %s3235_s9 = inlined_call_operand.vmem [shape: bf16[16,32], index: 9, kind: input, shape index: {}]   ;;  %s3236_s10 = inlined_call_operand.vmem [shape: f32[16,1], index: 10, kind: input, shape index: {}]   ;;  %s3237_s11 = inlined_call_operand.vmem [shape: f32[2,16,8], index: 11, kind: output, shape index: {}]  }
   0x1   :  { %3240 = sst [smem:[#allocation6_spill]] %s3228_s2  ;;  %s2862_s19 = smov 0  }
   0x2   :  { %3241 = sst [smem:[#allocation7_spill]] %s3229_s3 }
   0x3 LB: > { %3242 = sst [smem:[#allocation3_spill]] %s2776_s18  ;;  %s30_s20 = sadd.s32 1, %s2776_s18  ;;  %s2780_s19 = sphi %s2862_s19, %s21_s19   ;;  %s2776_s18 = sphi %s2860_s18, %s3249_s18   ;;  %s2772_s17 = sphi %s2858_s17, %s3248_s17  }
   0x4   : > { %3243 = sst [smem:[#allocation4_spill]] %s2780_s19  ;;  %p2357_p0 = scmp.ge.s32.totalorder %s2780_s19, 1 }
   0x5   : > { %p31_p1 = scmp.ge.s32.totalorder %s30_s20, 2  ;;  %p425_p2 = scmp.lt.s32.totalorder %s2780_s19, 3 }
   0x7   : > { %s3251_s20 = smov (%p31_p1, %s30_s20), 0  ;;  %p426_p3 = pnand %p2357_p0, %p425_p2 }
   0x8   : > { %3244 = sst [smem:[#allocation5_spill]] %s3251_s20  ;;  %p511_p4 = scmp.lt.s32.totalorder (!%p426_p3), %s2772_s17, 1 }
   0x9   : > { %429 = sbr.rel (%p426_p3) target bundleno = 4091 (0xffb), region = 64  ;;  %s3245_s2 = sld [smem:[#allocation6_spill]] (!%p426_p3) }
   0xa   : > { %s3246_s3 = sld [smem:[#allocation7_spill]] (!%p426_p3)  ;;  %p2367_p5 = scmp.ne.s32.totalorder (!%p426_p3), %s2772_s17, 0 }
  0x10   : > { %s2880_s21 = scalar_select %p511_p4, %s2772_s17, 1 }
  0x11   : > { %556 = sbr.rel (%p2367_p5) target bundleno = 24 (0x18), region = 68  ;;  %v557_v0 = vld [vmem:[%s3226_s0] sm:$0xff] (!%p2367_p5)  ;;  %vm559_vm0 = vcmask (!%p2367_p5), 261120   ;;  %v558_v1 = vld [vmem:[%s3226_s0 + $0x8] sm:$0xff] (!%p2367_p5) }
  0x12   : > { %s2423_s22 = sshll.u32 %s2880_s21, 4  ;;  %s2426_s23 = sshll.u32 %s2880_s21, 6  ;;  %560 = vst.msk [vmem:[#allocation2] sm:$0xff] (!%p2367_p5), %vm559_vm0, %v557_v0  ;;  %561 = vst.msk [vmem:[#allocation2 + $0x8] sm:$0xff] (!%p2367_p5), %vm559_vm0, %v558_v1 }
  0x13   : > { %s515_s26 = scalar_lea.vmem %s3245_s2, %s2423_s22  ;;  %s2890_s29 = scalar_lea.vmem %s3246_s3, %s2423_s22 }
  0x14   : > { %s2895_s13 = scalar_lea.vmem %s3230_s4, %s2423_s22  ;;  %s2900_s16 = scalar_lea.vmem %s3231_s5, %s2426_s23 }
  0x15   : > { %s2366_s20 = sshll.u32 %s2880_s21, 3  ;;  %s537_s24 = scalar_lea.vmem %s3233_s7, %s2880_s21 }
  0x16   : > { %s2910_s27 = scalar_lea.vmem %s3232_s6, %s2366_s20  ;;  %s540_s22 = scalar_lea.vmem %s3234_s8, %s2880_s21 }
  0x18 PF: > { %v2700_v2 = vld [vmem:[%s515_s26] sm:$0xff]   ;;  %v2782_v3 = vmov 0.0   ;;  %v2701_v4 = vld [vmem:[%s515_s26 + $0x8] sm:$0xff]   ;;  %vm2783_vm1 = vmmov 0   ;;  %vm598_vm2 = vcmask 261120   ;;  %s2784_s2 = smov 96  }
  0x19   : > { %2492 = vmatprep.subr.bf16.mxu1 %v2782_v3  ;;  %2518 = vmatprep.subr.bf16.mxu0 %v2782_v3  ;;  %v2927_v5 = vld [vmem:[#allocation2] sm:$0xff]  ;;  %v2929_v6 = vld [vmem:[#allocation2 + $0x8] sm:$0xff]  ;;  %s2785_s3 = smov 64   ;;  %s2786_s19 = smov 88   ;;  %vm664_vm3 = vcmask 64512   ;;  %vm791_vm4 = vcmask 1043456  }
  0x1a   : > { %2493 = vmatpush3.bf16.msra.mxu1 %v2700_v2  ;;  %2496 = vmatprep.mubr.msk.bf16.mxu1 %vm2783_vm1, %v2782_v3  ;;  %v2427_v7 = vpack.c.bf16 %v2929_v6, %v2927_v5  ;;  %v2368_v8 = vld [vmem:[%s537_s24] ss:$0 sm:$0xff]  ;;  %s2787_s20 = smov 120   ;;  %v2976_v30 = vld [vmem:[%s3227_s1 + $0x1] ss:$0 sm:$0xff]  ;;  %s2788_s25 = smov 56  }
  0x1b   : > { %2494 = vmatprep.subr.bf16.mxu1 %v2782_v3  ;;  %2520 = vmatprep.mubr.msk.bf16.mxu0 %vm2783_vm1, %v2782_v3  ;;  %v2969_v23 = vld [vmem:[%s3227_s1] ss:$0 sm:$0xff]  ;;  %s2789_s28 = smov 80   ;;  %s2790_s30 = smov 112  }
  0x1c   : > { %s2791_s23 = smov 48   ;;  %s2792_s12 = smov 72  }
  0x1d   : > { %s2793_s18 = smov 104   ;;  %p2413_p6 = scmp.ne.s32.totalorder %s2772_s17, 1 }
  0x1e   : > { %2495 = vmatpush3.bf16.msra.mxu1 %v2701_v4  ;;  %vm2796_vm5 = vmmov (!%p2413_p6), 0  }
  0x1f   : > { %2500 = vmatprep.subr.bf16.mxu1 %v2782_v3 }
  0x21   : > { %2497 = vmatmul.mubr.msk.bf16.vlgmr.msra.gmra.mrb[0].mxu1 %vm598_vm2, %v2427_v7 }
  0x22   : > { %2502 = vmatprep.mubr.msk.bf16.mxu1 %vm2783_vm1, %v2782_v3 }
  0xf4   : > { %v636_v9 = vpop.f32.mrb[0].mxu1 }
  0xf5   : > { %v637_v10 = vadd.f32 %v2368_v8, %v636_v9  ;;  %v2498_v11 = vpop.f32.mrb[1].mxu1 }
  0xf6   : > { %v639_v12 = vpop.f32.mrb[2].mxu1 }
  0xf7   : > { %v2940_v13 = vpack.c.bf16 %v637_v10, %v637_v10  ;;  %v640_v14 = vadd.f32 %v2368_v8, %v639_v12  ;;  %v2499_v15 = vpop.f32.mrb[3].mxu1 }
  0xf9   : > { %662 = vrot.lane.b32.xlu0 %v2940_v13, %s2784_s2  ;;  %v2943_v16 = vpack.c.bf16 %v640_v14, %v640_v14 }
  0xfd   : > { %712 = vrot.lane.b32.xlu0 %v2943_v16, %s2784_s2  ;;  %s2794_s2 = smov 40  }
 0x101   : > { %786 = vrot.lane.b32.xlu0 %v2940_v13, %s2785_s3 }
 0x105   : > { %889 = vrot.lane.b32.xlu0 %v2940_v13, %s2786_s19 }
 0x109   : > { %939 = vrot.lane.b32.xlu0 %v2943_v16, %s2786_s19 }
 0x10d   : > { %887 = vrot.lane.b32.xlu0 %v2940_v13, %s2787_s20 }
 0x111   : > { %937 = vrot.lane.b32.xlu0 %v2943_v16, %s2787_s20 }
 0x16b   : > { %v663_v17 = vpop.permute.xlu0 %662 }
 0x16c   : > { %v669_v18 = vsel %vm664_vm3, %v663_v17, 0 }
 0x16d   : > { %2501 = vmatpush3.bf16.xpose.msra.mxu1 %v669_v18 }
 0x16e   : > { %2506 = vmatprep.subr.bf16.mxu1 %v2782_v3 }
 0x16f   : > { %v713_v19 = vpop.permute.xlu0 %712 }
 0x170   : > { %v718_v20 = vsel %vm664_vm3, %v713_v19, 0 }
 0x173   : > { %v787_v21 = vpop.permute.xlu0 %786 }
 0x174   : > { %2503 = vmatmul.mubr.msk.bf16.vlgmr.msra.gmra.mrb[4].mxu1 %vm664_vm3, %v2940_v13  ;;  %v793_v22 = vsel %vm791_vm4, %v787_v21, 0 }
 0x175   : > { %2507 = vmatpush3.bf16.xpose.msra.mxu1 %v718_v20  ;;  %2508 = vmatprep.mubr.msk.bf16.mxu1 %vm2783_vm1, %v2782_v3 }
 0x176   : > { %2512 = vmatprep.subr.bf16.mxu1 %v2782_v3 }
 0x177   : > { %v890_v47 = vpop.permute.xlu0 %889 }
 0x178   : > { %v895_v49 = vsel %vm664_vm3, %v890_v47, 0 }
 0x17b   : > { %v940_v50 = vpop.permute.xlu0 %939 }
 0x17c   : > { %2509 = vmatmul.mubr.msk.bf16.vlgmr.msra.gmra.mrb[8].mxu1 %vm664_vm3, %v2943_v16  ;;  %v945_v53 = vsel %vm664_vm3, %v940_v50, 0 }
 0x17d   : > { %2513 = vmatpush3.bf16.msra.mxu1 %v793_v22  ;;  %2514 = vmatprep.mubr.msk.bf16.mxu1 %vm2783_vm1, %v2782_v3 }
 0x17e   : > { %2524 = vmatprep.subr.bf16.mxu1 %v2782_v3 }
 0x17f   : > { %v888_v52 = vpop.permute.xlu0 %887 }
 0x183   : > { %v938_v54 = vpop.permute.xlu0 %937 }
 0x247   : > { %v705_v24 = vpop.f32.mrb[4].mxu1 }
 0x248   : > { %v706_v25 = vadd.f32 %v2969_v23, %v705_v24  ;;  %v2504_v26 = vpop.f32.mrb[5].mxu1 }
 0x249   : > { %v708_v27 = vpop.f32.mrb[6].mxu1 }
 0x24a   : > { %v2505_v28 = vpop.f32.mrb[7].mxu1  ;;  %v760_v29 = vsel %vm664_vm3, %v706_v25, -inf }
 0x24b   : > { %761 = vmax.xlane.f32.xlu1 %v760_v29 }
 0x24f   : > { %v754_v31 = vpop.f32.mrb[8].mxu1 }
 0x250   : > { %v755_v32 = vadd.f32 %v2976_v30, %v754_v31  ;;  %v2510_v33 = vpop.f32.mrb[9].mxu1 }
 0x251   : > { %v757_v34 = vpop.f32.mrb[10].mxu1 }
 0x252   : > { %v2511_v35 = vpop.f32.mrb[11].mxu1  ;;  %v763_v36 = vsel %vm664_vm3, %v755_v32, -inf }
 0x253   : > { %764 = vmax.xlane.f32.xlu1 %v763_v36 }
 0x264   : > { %835 = vrot.lane.b32.xlu1 %v2943_v16, %s2785_s3 }
 0x2d8   : > { %v762_v37 = vpop.xlane.xlu1 %761 }
 0x2d9   : > { %v766_v38 = vsub.f32 %v706_v25, %v762_v37  ;;  %v643_v37 = vld [vmem:[%s2890_s29] sm:$0xf] }
 0x2db   : > { %v768_v39 = vpack.c.bf16 %v766_v38, %v766_v38  ;;  %v1174_v38 = vsel %vm791_vm4, %v643_v37, 0 }
 0x2dd   : > { %v771_v40 = vmul.bf16 1069105081, %v768_v39 }
 0x2df   : > { %2712 = vpow.bf16 %v771_v40 }
 0x2e0   : > { %v765_v41 = vpop.xlane.xlu1 %764 }
 0x2e1   : > { %v767_v42 = vsub.f32 %v755_v32, %v765_v41 }
 0x2e3   : > { %v769_v43 = vpack.c.bf16 %v767_v42, %v767_v42 }
 0x2e4   : > { %v836_v44 = vpop.permute.xlu1 %835 }
 0x2e5   : > { %v774_v45 = vmul.bf16 1069105081, %v769_v43  ;;  %v841_v46 = vsel %vm791_vm4, %v836_v44, 0 }
 0x2e6   : > { %2519 = vmatpush3.bf16.msra.mxu0 %v841_v46 }
 0x2e7   : > { %2714 = vpow.bf16 %v774_v45  ;;  %2530 = vmatprep.subr.bf16.mxu0 %v2782_v3 }
 0x2ea   : > { %v2713_v48 = vpop.eup %2712 }
 0x2eb   : > { %2515 = vmatmul.mubr.msk.bf16.vlgmr.msra.gmra.mrb[12].mxu1 %vm664_vm3, %v2713_v48  ;;  %v776_v15 = vunpack.c.l.bf16 %v2713_v48 }
 0x2ec   : > { %2525 = vmatpush3.bf16.xpose.msra.mxu1 %v895_v49  ;;  %2526 = vmatprep.mubr.msk.bf16.mxu1 %vm2783_vm1, %v2782_v3  ;;  %v644_v49 = vld [vmem:[%s2890_s29 + $0x4] sm:$0xf] }
 0x2ed   : > { %2536 = vmatprep.subr.bf16.mxu1 %v2782_v3  ;;  %v778_v17 = vsel %vm664_vm3, %v776_v15, 0.0  ;;  %v1122_v50 = vsel %vm791_vm4, %v644_v49, 0 }
 0x2f2   : > { %v2715_v51 = vpop.eup %2714 }
 0x2f3   : > { %2521 = vmatmul.mubr.msk.bf16.vlgmr.msra.gmra.mrb[0].mxu0 %vm664_vm3, %v2715_v51  ;;  %2527 = vmatmul.mubr.msk.bf16.vlgmr.msra.gmra.mrb[16].mxu1 %vm664_vm3, %v888_v52  ;;  %v777_v18 = vunpack.c.l.bf16 %v2715_v51 }
 0x2f4   : > { %2531 = vmatpush3.bf16.xpose.msra.mxu0 %v945_v53  ;;  %2532 = vmatprep.mubr.msk.bf16.mxu0 %vm2783_vm1, %v2782_v3 }
 0x2f5   : > { %2542 = vmatprep.subr.bf16.mxu0 %v2782_v3  ;;  %2538 = vmatprep.mubr.msk.bf16.mxu1 %vm2783_vm1, %v2782_v3  ;;  %v781_v19 = vsel %vm664_vm3, %v777_v18, 0.0 }
 0x2fb   : > { %2533 = vmatmul.mubr.msk.bf16.vlgmr.msra.gmra.mrb[4].mxu0 %vm664_vm3, %v938_v54 }
 0x2fc   : > { %2544 = vmatprep.mubr.msk.bf16.mxu0 %vm2783_vm1, %v2782_v3 }
 0x3be   : > { %v3000_v55 = vpop.f32.mrb[12].mxu1 }
 0x3bf   : > { %v2516_v56 = vpop.f32.mrb[13].mxu1 }
 0x3c0   : > { %v832_v57 = vpop.f32.mrb[14].mxu1 }
 0x3c1   : > { %v2517_v58 = vpop.f32.mrb[15].mxu1 }
 0x3c6   : > { %v3002_v59 = vpop.f32.mrb[0].mxu0  ;;  %v931_v60 = vpop.f32.mrb[16].mxu1 }
 0x3c7   : > { %v932_v61 = vadd.f32 %v2969_v23, %v931_v60  ;;  %v2522_v62 = vpop.f32.mrb[1].mxu0  ;;  %v2528_v63 = vpop.f32.mrb[17].mxu1 }
 0x3c8   : > { %v880_v0 = vpop.f32.mrb[2].mxu0  ;;  %v934_v1 = vpop.f32.mrb[18].mxu1 }
 0x3c9   : > { %v2523_v2 = vpop.f32.mrb[3].mxu0  ;;  %v2529_v4 = vpop.f32.mrb[19].mxu1  ;;  %v987_v7 = vsel %vm664_vm3, %v932_v61, -inf }
 0x3ca   : > { %988 = vmax.xlane.f32.xlu1 %v987_v7 }
 0x3ce   : > { %v981_v8 = vpop.f32.mrb[4].mxu0 }
 0x3cf   : > { %v982_v9 = vadd.f32 %v2976_v30, %v981_v8  ;;  %v2534_v10 = vpop.f32.mrb[5].mxu0 }
 0x3d0   : > { %v984_v11 = vpop.f32.mrb[6].mxu0 }
 0x3d1   : > { %v2535_v12 = vpop.f32.mrb[7].mxu0  ;;  %v990_v14 = vsel %vm664_vm3, %v982_v9, -inf }
 0x3d2   : > { %991 = vmax.xlane.f32.xlu0 %v990_v14 }
 0x3db   : > { %1061 = vrot.lane.b32.xlu1 %v2943_v16, %s2788_s25 }
 0x3e8   : > { %1013 = vrot.lane.b32.xlu0 %v2940_v13, %s2788_s25 }
 0x3ff   : > { %779 = vadd.xlane.f32.xlu1 %v778_v17 }
 0x407   : > { %782 = vadd.xlane.f32.xlu0 %v781_v19 }
 0x457   : > { %v989_v20 = vpop.xlane.xlu1 %988 }
 0x458   : > { %v993_v21 = vsub.f32 %v932_v61, %v989_v20 }
 0x45a   : > { %v995_v22 = vpack.c.bf16 %v993_v21, %v993_v21 }
 0x45b   : > { %v1062_v24 = vpop.permute.xlu1 %1061 }
 0x45c   : > { %v998_v25 = vmul.bf16 1069105081, %v995_v22  ;;  %v1067_v26 = vsel %vm791_vm4, %v1062_v24, 0 }
 0x45d   : > { %2543 = vmatpush3.bf16.msra.mxu0 %v1067_v26 }
 0x45e   : > { %2716 = vpow.bf16 %v998_v25  ;;  %2554 = vmatprep.subr.bf16.mxu0 %v2782_v3 }
 0x45f   : > { %v992_v27 = vpop.xlane.xlu0 %991 }
 0x460   : > { %v994_v28 = vsub.f32 %v982_v9, %v992_v27 }
 0x462   : > { %v996_v29 = vpack.c.bf16 %v994_v28, %v994_v28 }
 0x463   : > { %v1014_v31 = vpop.permute.xlu0 %1013 }
 0x464   : > { %v1001_v32 = vmul.bf16 1069105081, %v996_v29  ;;  %v1019_v33 = vsel %vm791_vm4, %v1014_v31, 0 }
 0x465   : > { %2537 = vmatpush3.bf16.msra.mxu1 %v1019_v33 }
 0x466   : > { %2718 = vpow.bf16 %v1001_v32  ;;  %2548 = vmatprep.subr.bf16.mxu1 %v2782_v3 }
 0x469   : > { %v2717_v34 = vpop.eup %2716 }
 0x46a   : > { %2539 = vmatmul.mubr.msk.bf16.vlgmr.msra.gmra.mrb[20].mxu1 %vm664_vm3, %v2717_v34  ;;  %v1003_v35 = vunpack.c.l.bf16 %v2717_v34 }
 0x46b   : > { %2550 = vmatprep.mubr.msk.bf16.mxu1 %vm2783_vm1, %v2782_v3  ;;  %2549 = vmatpush3.bf16.msra.mxu1 %v1122_v50 }
 0x46c   : > { %v1005_v36 = vsel %vm664_vm3, %v1003_v35, 0.0  ;;  %2560 = vmatprep.subr.bf16.mxu1 %v2782_v3 }
 0x46d   : > { %1006 = vadd.xlane.f32.xlu0 %v1005_v36 }
 0x471   : > { %v2719_v39 = vpop.eup %2718 }
 0x472   : > { %2545 = vmatmul.mubr.msk.bf16.vlgmr.msra.gmra.mrb[8].mxu0 %vm664_vm3, %v2719_v39  ;;  %v1004_v40 = vunpack.c.l.bf16 %v2719_v39 }
 0x473   : > { %2555 = vmatpush3.bf16.msra.mxu0 %v1174_v38  ;;  %2556 = vmatprep.mubr.msk.bf16.mxu0 %vm2783_vm1, %v2782_v3 }
 0x474   : > { %v1008_v41 = vsel %vm664_vm3, %v1004_v40, 0.0  ;;  %2566 = vmatprep.subr.bf16.mxu0 %v2782_v3 }
 0x475   : > { %1009 = vadd.xlane.f32.xlu1 %v1008_v41 }
 0x483   : > { %1219 = vrot.lane.b32.xlu0 %v2940_v13, %s2789_s28 }
 0x486   : > { %1269 = vrot.lane.b32.xlu1 %v2943_v16, %s2789_s28 }
 0x487   : > { %1267 = vrot.lane.b32.xlu0 %v2943_v16, %s2790_s30 }
 0x48a   : > { %1217 = vrot.lane.b32.xlu1 %v2940_v13, %s2790_s30 }
 0x48c   : > { %v780_v42 = vpop.xlane.xlu1 %779 }
 0x48d   : > { %2720 = vrcp.f32 %v780_v42 }
 0x494   : > { %v783_v43 = vpop.xlane.xlu0 %782 }
 0x495   : > { %2722 = vrcp.f32 %v783_v43 }
 0x497   : > { %v2721_v44 = vpop.eup %2720 }
 0x498   : > { %v883_v46 = vmul.f32 %v2721_v44, %v3000_v55 }
 0x49f   : > { %v2723_v45 = vpop.eup %2722 }
 0x4a0   : > { %v884_v47 = vmul.f32 %v2723_v45, %v3002_v59 }
 0x4a2   : > { %v2429_v48 = vpack.c.bf16 %v884_v47, %v883_v46 }
 0x4a4   : > { %2557 = vmatmul.mubr.msk.bf16.vlgmr.msra.gmra.mrb[12].mxu0 %vm664_vm3, %v2429_v48 }
 0x4a5   : > { %2568 = vmatprep.mubr.msk.bf16.mxu0 %vm2783_vm1, %v2782_v3 }
 0x4fa   : > { %v1007_v51 = vpop.xlane.xlu0 %1006 }
 0x4fb   : > { %2724 = vrcp.f32 %v1007_v51 }
 0x4fe   : > { %v1220_v55 = vpop.permute.xlu0 %1219 }
 0x4ff   : > { %v1225_v9 = vsel %vm664_vm3, %v1220_v55, 0  ;;  %v645_v55 = vld [vmem:[%s2890_s29 + $0x8] sm:$0xf] }
 0x502   : > { %v1010_v52 = vpop.xlane.xlu1 %1009  ;;  %v1268_v56 = vpop.permute.xlu0 %1267 }
 0x503   : > { %2726 = vrcp.f32 %v1010_v52 }
 0x505   : > { %v2725_v61 = vpop.eup %2724 }
 0x506   : > { %v1270_v53 = vpop.permute.xlu1 %1269 }
 0x507   : > { %v1275_v54 = vsel %vm664_vm3, %v1270_v53, 0 }
 0x508   : > { %2567 = vmatpush3.bf16.xpose.msra.mxu0 %v1275_v54 }
 0x509   : > { %2578 = vmatprep.subr.bf16.mxu0 %v2782_v3 }
 0x50a   : > { %v1218_v10 = vpop.permute.xlu1 %1217 }
 0x50d   : > { %v2727_v62 = vpop.eup %2726 }
 0x50f   : > { %2569 = vmatmul.mubr.msk.bf16.vlgmr.msra.gmra.mrb[16].mxu0 %vm664_vm3, %v1268_v56 }
 0x510   : > { %2580 = vmatprep.mubr.msk.bf16.mxu0 %vm2783_vm1, %v2782_v3 }
 0x53d   : > { %v1055_v57 = vpop.f32.mrb[20].mxu1 }
 0x53e   : > { %v2540_v58 = vpop.f32.mrb[21].mxu1  ;;  %v1109_v0 = vmul.f32 %v2725_v61, %v1055_v57  ;;  %v1452_v57 = vsel %vm791_vm4, %v645_v55, 0 }
 0x53f   : > { %v1058_v59 = vpop.f32.mrb[22].mxu1 }
 0x540   : > { %v2541_v60 = vpop.f32.mrb[23].mxu1 }
 0x545   : > { %v1103_v63 = vpop.f32.mrb[8].mxu0 }
 0x546   : > { %v1110_v1 = vmul.f32 %v2727_v62, %v1103_v63  ;;  %v2546_v2 = vpop.f32.mrb[9].mxu0 }
 0x547   : > { %v1106_v4 = vpop.f32.mrb[10].mxu0 }
 0x548   : > { %v2428_v7 = vpack.c.bf16 %v1110_v1, %v1109_v0  ;;  %v2547_v8 = vpop.f32.mrb[11].mxu0 }
 0x54a   : > { %2551 = vmatmul.mubr.msk.bf16.vlgmr.msra.gmra.mrb[24].mxu1 %vm664_vm3, %v2428_v7 }
 0x54b   : > { %2561 = vmatpush3.bf16.xpose.msra.mxu1 %v1225_v9  ;;  %2562 = vmatprep.mubr.msk.bf16.mxu1 %vm2783_vm1, %v2782_v3 }
 0x54c   : > { %2572 = vmatprep.subr.bf16.mxu1 %v2782_v3 }
 0x552   : > { %2563 = vmatmul.mubr.msk.bf16.vlgmr.msra.gmra.mrb[28].mxu1 %vm664_vm3, %v1218_v10 }
 0x553   : > { %2574 = vmatprep.mubr.msk.bf16.mxu1 %vm2783_vm1, %v2782_v3 }
 0x577   : > { %v1210_v11 = vpop.f32.mrb[12].mxu0 }
 0x578   : > { %v2558_v12 = vpop.f32.mrb[13].mxu0 }
 0x579   : > { %v1213_v14 = vpop.f32.mrb[14].mxu0 }
 0x57a   : > { %v2559_v15 = vpop.f32.mrb[15].mxu0 }
 0x5e2   : > { %v1311_v17 = vpop.f32.mrb[16].mxu0 }
 0x5e3   : > { %v1312_v18 = vadd.f32 %v2976_v30, %v1311_v17  ;;  %v2570_v19 = vpop.f32.mrb[17].mxu0 }
 0x5e4   : > { %v1314_v20 = vpop.f32.mrb[18].mxu0 }
 0x5e5   : > { %v2571_v21 = vpop.f32.mrb[19].mxu0  ;;  %v1320_v22 = vsel %vm664_vm3, %v1312_v18, -inf }
 0x5e6   : > { %1321 = vmax.xlane.f32.xlu0 %v1320_v22 }
 0x5fc   : > { %1343 = vrot.lane.b32.xlu0 %v2940_v13, %s2791_s23 }
 0x61d   : > { %v1158_v24 = vpop.f32.mrb[24].mxu1 }
 0x61e   : > { %v3055_v25 = vadd.f32 %v1210_v11, %v1158_v24  ;;  %v2552_v26 = vpop.f32.mrb[25].mxu1 }
 0x61f   : > { %v1161_v27 = vpop.f32.mrb[26].mxu1 }
 0x620   : > { %v3057_v28 = vadd.f32 %v1213_v14, %v1161_v27  ;;  %v2553_v29 = vpop.f32.mrb[27].mxu1 }
 0x625   : > { %v1261_v31 = vpop.f32.mrb[28].mxu1 }
 0x626   : > { %v1262_v32 = vadd.f32 %v2969_v23, %v1261_v31  ;;  %v2564_v33 = vpop.f32.mrb[29].mxu1 }
 0x627   : > { %v1264_v34 = vpop.f32.mrb[30].mxu1 }
 0x628   : > { %v2565_v35 = vpop.f32.mrb[31].mxu1  ;;  %v1317_v36 = vsel %vm664_vm3, %v1262_v32, -inf }
 0x629   : > { %1318 = vmax.xlane.f32.xlu1 %v1317_v36 }
 0x63a   : > { %1391 = vrot.lane.b32.xlu1 %v2943_v16, %s2791_s23 }
 0x673   : > { %v1322_v37 = vpop.xlane.xlu0 %1321 }
 0x674   : > { %v1324_v38 = vsub.f32 %v1312_v18, %v1322_v37 }
 0x676   : > { %v1326_v39 = vpack.c.bf16 %v1324_v38, %v1324_v38 }
 0x677   : > { %v1344_v40 = vpop.permute.xlu0 %1343 }
 0x678   : > { %v1331_v41 = vmul.bf16 1069105081, %v1326_v39  ;;  %v1349_v42 = vsel %vm791_vm4, %v1344_v40, 0 }
 0x679   : > { %2573 = vmatpush3.bf16.msra.mxu1 %v1349_v42 }
 0x67a   : > { %2728 = vpow.bf16 %v1331_v41  ;;  %2584 = vmatprep.subr.bf16.mxu1 %v2782_v3 }
 0x685   : > { %v2729_v43 = vpop.eup %2728 }
 0x686   : > { %v1334_v44 = vunpack.c.l.bf16 %v2729_v43 }
 0x688   : > { %v1338_v45 = vsel %vm664_vm3, %v1334_v44, 0.0 }
 0x689   : > { %1339 = vadd.xlane.f32.xlu0 %v1338_v45 }
 0x69f   : > { %1499 = vrot.lane.b32.xlu0 %v2940_v13, %s2792_s12 }
 0x6a3   : > { %1547 = vrot.lane.b32.xlu0 %v2943_v16, %s2793_s18 }
 0x6b6   : > { %v1319_v46 = vpop.xlane.xlu1 %1318 }
 0x6b7   : > { %v1323_v47 = vsub.f32 %v1262_v32, %v1319_v46 }
 0x6b9   : > { %v1325_v48 = vpack.c.bf16 %v1323_v47, %v1323_v47 }
 0x6ba   : > { %v1392_v49 = vpop.permute.xlu1 %1391 }
 0x6bb   : > { %v1328_v50 = vmul.bf16 1069105081, %v1325_v48  ;;  %v1397_v51 = vsel %vm791_vm4, %v1392_v49, 0 }
 0x6bc   : > { %2579 = vmatpush3.bf16.msra.mxu0 %v1397_v51 }
 0x6bd   : > { %2730 = vpow.bf16 %v1328_v50  ;;  %2590 = vmatprep.subr.bf16.mxu0 %v2782_v3 }
 0x6bf   : > { %2581 = vmatmul.mubr.msk.bf16.vlgmr.msra.gmra.mrb[20].mxu0 %vm664_vm3, %v2729_v43 }
 0x6c0   : > { %2592 = vmatprep.mubr.msk.bf16.mxu0 %vm2783_vm1, %v2782_v3 }
 0x6c8   : > { %v2731_v52 = vpop.eup %2730 }
 0x6c9   : > { %2575 = vmatmul.mubr.msk.bf16.vlgmr.msra.gmra.mrb[32].mxu1 %vm664_vm3, %v2731_v52  ;;  %v1333_v53 = vunpack.c.l.bf16 %v2731_v52 }
 0x6ca   : > { %2586 = vmatprep.mubr.msk.bf16.mxu1 %vm2783_vm1, %v2782_v3  ;;  %2585 = vmatpush3.bf16.msra.mxu1 %v1452_v57 }
 0x6cb   : > { %v1335_v54 = vsel %vm664_vm3, %v1333_v53, 0.0  ;;  %2596 = vmatprep.subr.bf16.mxu1 %v2782_v3  ;;  %v646_v53 = vld [vmem:[%s2890_s29 + $0xc] sm:$0xf] }
 0x6cc   : > { %1336 = vadd.xlane.f32.xlu1 %v1335_v54  ;;  %v1732_v54 = vsel %vm791_vm4, %v646_v53, 0 }
 0x6dd   : > { %1549 = vrot.lane.b32.xlu1 %v2943_v16, %s2792_s12 }
 0x6e1   : > { %1497 = vrot.lane.b32.xlu1 %v2940_v13, %s2793_s18 }
 0x716   : > { %v1340_v56 = vpop.xlane.xlu0 %1339 }
 0x717   : > { %2732 = vrcp.f32 %v1340_v56 }
 0x71a   : > { %v1500_v58 = vpop.permute.xlu0 %1499 }
 0x71b   : > { %v1505_v59 = vsel %vm664_vm3, %v1500_v58, 0 }
 0x71c   : > { %2591 = vmatpush3.bf16.xpose.msra.mxu0 %v1505_v59 }
 0x71d   : > { %2602 = vmatprep.subr.bf16.mxu0 %v2782_v3 }
 0x71e   : > { %v1548_v18 = vpop.permute.xlu0 %1547 }
 0x721   : > { %v2733_v63 = vpop.eup %2732 }
 0x759   : > { %v1337_v60 = vpop.xlane.xlu1 %1336 }
 0x75a   : > { %2734 = vrcp.f32 %v1337_v60 }
 0x75d   : > { %v1550_v61 = vpop.permute.xlu1 %1549 }
 0x75e   : > { %v1555_v17 = vsel %vm664_vm3, %v1550_v61, 0 }
 0x761   : > { %v1498_v62 = vpop.permute.xlu1 %1497 }
 0x762   : > { %2593 = vmatmul.mubr.msk.bf16.vlgmr.msra.gmra.mrb[24].mxu0 %vm664_vm3, %v1498_v62 }
 0x763   : > { %2604 = vmatprep.mubr.msk.bf16.mxu0 %vm2783_vm1, %v2782_v3 }
 0x764   : > { %v2735_v8 = vpop.eup %2734 }
 0x792   : > { %v1433_v0 = vpop.f32.mrb[20].mxu0 }
 0x793   : > { %v1440_v1 = vmul.f32 %v2733_v63, %v1433_v0  ;;  %v2582_v2 = vpop.f32.mrb[21].mxu0 }
 0x794   : > { %v1436_v4 = vpop.f32.mrb[22].mxu0 }
 0x795   : > { %v2583_v7 = vpop.f32.mrb[23].mxu0 }
 0x79c   : > { %v1385_v9 = vpop.f32.mrb[32].mxu1 }
 0x79d   : > { %v1439_v10 = vmul.f32 %v2735_v8, %v1385_v9  ;;  %v2576_v11 = vpop.f32.mrb[33].mxu1  ;;  %v1777_v9 = vlaneseq }
 0x79e   : > { %v1388_v12 = vpop.f32.mrb[34].mxu1 }
 0x79f   : > { %v2430_v14 = vpack.c.bf16 %v1440_v1, %v1439_v10  ;;  %v2577_v15 = vpop.f32.mrb[35].mxu1  ;;  %v3124_v10 = vshrl.u32 %v1777_v9, 7  ;;  %v3128_v12 = vld [vmem:[%s2910_s27] sm:$0x3f] }
 0x7a1   : > { %2587 = vmatmul.mubr.msk.bf16.vlgmr.msra.gmra.mrb[36].mxu1 %vm664_vm3, %v2430_v14  ;;  %v1779_v11 = vsub.s32 0, %v3124_v10 }
 0x7a2   : > { %2597 = vmatpush3.bf16.xpose.msra.mxu1 %v1555_v17  ;;  %2598 = vmatprep.mubr.msk.bf16.mxu1 %vm2783_vm1, %v2782_v3 }
 0x7a3   : > { %2608 = vmatprep.subr.bf16.mxu1 %v2782_v3  ;;  %v1780_v14 = vrot.slane %v3128_v12, %v1779_v11 }
 0x7a9   : > { %2599 = vmatmul.mubr.msk.bf16.vlgmr.msra.gmra.mrb[40].mxu1 %vm664_vm3, %v1548_v18 }
 0x7aa   : > { %2610 = vmatprep.mubr.msk.bf16.mxu1 %vm2783_vm1, %v2782_v3 }
 0x835   : > { %v1541_v19 = vpop.f32.mrb[24].mxu0 }
 0x836   : > { %v1542_v20 = vadd.f32 %v2969_v23, %v1541_v19  ;;  %v2594_v21 = vpop.f32.mrb[25].mxu0 }
 0x837   : > { %v1544_v22 = vpop.f32.mrb[26].mxu0 }
 0x838   : > { %v2595_v24 = vpop.f32.mrb[27].mxu0  ;;  %v1597_v26 = vsel %vm664_vm3, %v1542_v20, -inf }
 0x839   : > { %1598 = vmax.xlane.f32.xlu1 %v1597_v26 }
 0x84a   : > { %1671 = vrot.lane.b32.xlu1 %v2943_v16, %s2794_s2 }
 0x874   : > { %v1488_v27 = vpop.f32.mrb[36].mxu1 }
 0x875   : > { %v3098_v29 = vadd.f32 %v1488_v27, %v3055_v25  ;;  %v2588_v31 = vpop.f32.mrb[37].mxu1 }
 0x876   : > { %v1491_v32 = vpop.f32.mrb[38].mxu1 }
 0x877   : > { %v3101_v33 = vadd.f32 %v1491_v32, %v3057_v28  ;;  %v2589_v34 = vpop.f32.mrb[39].mxu1 }
 0x87c   : > { %v1591_v23 = vpop.f32.mrb[40].mxu1 }
 0x87d   : > { %v1592_v35 = vadd.f32 %v2976_v30, %v1591_v23  ;;  %v2600_v36 = vpop.f32.mrb[41].mxu1 }
 0x87e   : > { %v1594_v37 = vpop.f32.mrb[42].mxu1 }
 0x87f   : > { %v2601_v38 = vpop.f32.mrb[43].mxu1  ;;  %v1600_v39 = vsel %vm664_vm3, %v1592_v35, -inf }
 0x880   : > { %1601 = vmax.xlane.f32.xlu0 %v1600_v39 }
 0x896   : > { %1623 = vrot.lane.b32.xlu0 %v2940_v13, %s2794_s2 }
 0x8c6   : > { %v1599_v16 = vpop.xlane.xlu1 %1598 }
 0x8c7   : > { %v1603_v25 = vsub.f32 %v1542_v20, %v1599_v16  ;;  %v2703_v16 = vld [vmem:[%s2895_s13 + $0x8] sm:$0xff]  }
 0x8c9   : > { %v1605_v40 = vpack.c.bf16 %v1603_v25, %v1603_v25 }
 0x8ca   : > { %v1672_v41 = vpop.permute.xlu1 %1671 }
 0x8cb   : > { %v1608_v42 = vmul.bf16 1069105081, %v1605_v40  ;;  %v1677_v28 = vsel %vm791_vm4, %v1672_v41, 0 }
 0x8cc   : > { %2609 = vmatpush3.bf16.msra.mxu1 %v1677_v28 }
 0x8cd   : > { %2736 = vpow.bf16 %v1608_v42  ;;  %2620 = vmatprep.subr.bf16.mxu1 %v2782_v3 }
 0x8d8   : > { %v2737_v30 = vpop.eup %2736 }
 0x8d9   : > { %v1613_v43 = vunpack.c.l.bf16 %v2737_v30 }
 0x8db   : > { %v1615_v44 = vsel %vm664_vm3, %v1613_v43, 0.0  ;;  %v1814_v43 = vsub.s32 1, %v3124_v10 }
 0x8dc   : > { %1616 = vadd.xlane.f32.xlu1 %v1615_v44 }
 0x8dd   : > { %v1815_v44 = vrot.slane %v3128_v12, %v1814_v43 }
 0x90d   : > { %v1602_v45 = vpop.xlane.xlu0 %1601 }
 0x90e   : > { %v1604_v46 = vsub.f32 %v1592_v35, %v1602_v45  ;;  %v1820_v45 = vsub.s32 2, %v3124_v10 }
 0x910   : > { %v1606_v13 = vpack.c.bf16 %v1604_v46, %v1604_v46 }
 0x911   : > { %v1624_v47 = vpop.permute.xlu0 %1623 }
 0x912   : > { %v1611_v48 = vmul.bf16 1069105081, %v1606_v13  ;;  %v1629_v49 = vsel %vm791_vm4, %v1624_v47, 0 }
 0x913   : > { %2603 = vmatpush3.bf16.msra.mxu0 %v1629_v49 }
 0x914   : > { %2738 = vpow.bf16 %v1611_v48  ;;  %2614 = vmatprep.subr.bf16.mxu0 %v2782_v3 }
 0x916   : > { %2605 = vmatmul.mubr.msk.bf16.vlgmr.msra.gmra.mrb[28].mxu0 %vm664_vm3, %v2737_v30 }
 0x917   : > { %2616 = vmatprep.mubr.msk.bf16.mxu0 %vm2783_vm1, %v2782_v3  ;;  %2615 = vmatpush3.bf16.msra.mxu0 %v1732_v54 }
 0x918   : > { %2628 = vmatprep.subr.bf16.mxu0 %v2782_v3 }
 0x91f   : > { %v2739_v50 = vpop.eup %2738 }
 0x920   : > { %2611 = vmatmul.mubr.msk.bf16.vlgmr.msra.gmra.mrb[44].mxu1 %vm664_vm3, %v2739_v50  ;;  %v1614_v51 = vunpack.c.l.bf16 %v2739_v50  ;;  %v1821_v50 = vrot.slane %v3128_v12, %v1820_v45 }
 0x921   : > { %2624 = vmatprep.mubr.msk.bf16.mxu1 %vm2783_vm1, %v2782_v3 }
 0x922   : > { %v1618_v52 = vsel %vm664_vm3, %v1614_v51, 0.0 }
 0x923   : > { %1619 = vadd.xlane.f32.xlu0 %v1618_v52 }
 0x969   : > { %v1617_v55 = vpop.xlane.xlu1 %1616 }
 0x96a   : > { %2740 = vrcp.f32 %v1617_v55  ;;  %v2704_v55 = vld [vmem:[%s2900_s16] sm:$0xff]  }
 0x974   : > { %v2741_v61 = vpop.eup %2740 }
 0x9b0   : > { %v1620_v56 = vpop.xlane.xlu0 %1619 }
 0x9b1   : > { %2742 = vrcp.f32 %v1620_v56  ;;  %v2705_v56 = vld [vmem:[%s2900_s16 + $0x8] sm:$0xff]  }
 0x9bb   : > { %v2743_v62 = vpop.eup %2742 }
 0x9e9   : > { %v1665_v57 = vpop.f32.mrb[28].mxu0 }
 0x9ea   : > { %v2606_v58 = vpop.f32.mrb[29].mxu0  ;;  %v1719_v0 = vmul.f32 %v2741_v61, %v1665_v57  ;;  %v2706_v57 = vld [vmem:[%s2900_s16 + $0x10] sm:$0xff]  }
 0x9eb   : > { %v1668_v59 = vpop.f32.mrb[30].mxu0  ;;  %v2707_v58 = vld [vmem:[%s2900_s16 + $0x18] sm:$0xff]   ;;  %v2710_v61 = vld [vmem:[%s2900_s16 + $0x30] sm:$0xff]  }
 0x9ec   : > { %v2607_v60 = vpop.f32.mrb[31].mxu0  ;;  %v2708_v59 = vld [vmem:[%s2900_s16 + $0x20] sm:$0xff]  }
 0x9ed   : > { %v2709_v60 = vld [vmem:[%s2900_s16 + $0x28] sm:$0xff]  }
 0x9f3   : > { %v1713_v63 = vpop.f32.mrb[44].mxu1 }
 0x9f4   : > { %v1720_v1 = vmul.f32 %v2743_v62, %v1713_v63  ;;  %v2612_v2 = vpop.f32.mrb[45].mxu1  ;;  %v2711_v62 = vld [vmem:[%s2900_s16 + $0x38] sm:$0xff]   ;;  %v2399_v63 = vld [vmem:[%s540_s22] ss:$0 sm:$0xff] }
 0x9f5   : > { %v1716_v4 = vpop.f32.mrb[46].mxu1 }
 0x9f6   : > { %v2431_v7 = vpack.c.bf16 %v1720_v1, %v1719_v0  ;;  %v2613_v8 = vpop.f32.mrb[47].mxu1 }
 0x9f8   : > { %2617 = vmatmul.mubr.msk.bf16.vlgmr.msra.gmra.mrb[32].mxu0 %vm664_vm3, %v2431_v7 }
 0x9f9   : > { %2644 = vmatprep.mubr.msk.bf16.mxu0 %vm2783_vm1, %v2782_v3  ;;  %2629 = vmatpush3.bf16.msra.mxu0 %v2704_v55 }
 0x9fa   : > { %2630 = vmatprep.subr.bf16.mxu0 %v2782_v3 }
 0x9fd   : > { %2631 = vmatpush3.bf16.msra.mxu0 %v2705_v56 }
 0x9fe   : > { %2632 = vmatprep.subr.bf16.mxu0 %v2782_v3 }
 0xa01   : > { %2633 = vmatpush3.bf16.msra.mxu0 %v2706_v57  ;;  %v2062_v57 = vsub.s32 3, %v3124_v10 }
 0xa02   : > { %2634 = vmatprep.subr.bf16.mxu0 %v2782_v3 }
 0xa05   : > { %2635 = vmatpush3.bf16.msra.mxu0 %v2707_v58  ;;  %v2068_v58 = vsub.s32 4, %v3124_v10 }
 0xa06   : > { %2636 = vmatprep.subr.bf16.mxu0 %v2782_v3 }
 0xa09   : > { %2637 = vmatpush3.bf16.msra.mxu0 %v2708_v59  ;;  %v2063_v59 = vrot.slane %v3128_v12, %v2062_v57 }
 0xa0a   : > { %2638 = vmatprep.subr.bf16.mxu0 %v2782_v3 }
 0xa0d   : > { %2639 = vmatpush3.bf16.msra.mxu0 %v2709_v60 }
 0xa0e   : > { %2640 = vmatprep.subr.bf16.mxu0 %v2782_v3 }
 0xa11   : > { %2641 = vmatpush3.bf16.msra.mxu0 %v2710_v61  ;;  %v2069_v61 = vrot.slane %v3128_v12, %v2068_v58 }
 0xa12   : > { %2642 = vmatprep.subr.bf16.mxu0 %v2782_v3 }
 0xa15   : > { %2643 = vmatpush3.bf16.msra.mxu0 %v2711_v62 }
 0xacb   : > { %v1768_v15 = vpop.f32.mrb[32].mxu0 }
 0xacc   : > { %v1775_v17 = vadd.f32 %v1768_v15, %v3098_v29  ;;  %v2618_v18 = vpop.f32.mrb[33].mxu0 }
 0xacd   : > { %v1771_v19 = vpop.f32.mrb[34].mxu0 }
 0xace   : > { %v1781_v20 = vadd.f32 %v1780_v14, %v1775_v17  ;;  %v1776_v21 = vadd.f32 %v1771_v19, %v3101_v33  ;;  %v2619_v22 = vpop.f32.mrb[35].mxu0 }
 0xad0   : > { %v1782_v24 = vadd.f32 %v1780_v14, %v1776_v21  ;;  %v1783_v26 = vadd.f32 %v1781_v20, %v2927_v5 }
 0xad2   : > { %v1785_v27 = vsel %vm598_vm2, %v1783_v26, 0.0  ;;  %v1784_v31 = vadd.f32 %v1782_v24, %v2929_v6  ;;  %v2702_v6 = vld [vmem:[%s2895_s13] sm:$0xff]  }
 0xad3   : > { %1786 = vadd.xlane.f32.xlu0 %v1785_v27  ;;  %2621 = vmatpush3.bf16.msra.mxu1 %v2702_v6 }
 0xad4   : > { %v1788_v32 = vsel %vm598_vm2, %v1784_v31, 0.0  ;;  %2622 = vmatprep.subr.bf16.mxu1 %v2782_v3 }
 0xad5   : > { %1789 = vadd.xlane.f32.xlu1 %v1788_v32 }
 0xad7   : > { %2623 = vmatpush3.bf16.msra.mxu1 %v2703_v16 }
 0xb60   : > { %v1787_v29 = vpop.xlane.xlu0 %1786 }
 0xb61   : > { %v1792_v34 = vmul.f32 0.03125, %v1787_v29 }
 0xb62   : > { %v1790_v23 = vpop.xlane.xlu1 %1789 }
 0xb63   : > { %v1794_v35 = vsub.f32 %v1783_v26, %v1792_v34  ;;  %v1793_v36 = vmul.f32 0.03125, %v1790_v23 }
 0xb65   : > { %v1795_v33 = vsub.f32 %v1784_v31, %v1793_v36  ;;  %v1796_v37 = vmul.f32 %v1794_v35, %v1794_v35 }
 0xb67   : > { %v1798_v38 = vsel %vm598_vm2, %v1796_v37, 0.0  ;;  %v1797_v5 = vmul.f32 %v1795_v33, %v1795_v33 }
 0xb68   : > { %1799 = vadd.xlane.f32.xlu0 %v1798_v38 }
 0xb69   : > { %v1801_v39 = vsel %vm598_vm2, %v1797_v5, 0.0 }
 0xb6a   : > { %1802 = vadd.xlane.f32.xlu1 %v1801_v39 }
 0xbf5   : > { %v1800_v25 = vpop.xlane.xlu0 %1799 }
 0xbf6   : > { %v1804_v40 = vmul.f32 0.03125, %v1800_v25 }
 0xbf7   : > { %v1803_v41 = vpop.xlane.xlu1 %1802 }
 0xbf8   : > { %v1806_v42 = vadd.f32 1e-05, %v1804_v40  ;;  %v1805_v28 = vmul.f32 0.03125, %v1803_v41 }
 0xbfa   : > { %2744 = vrsqrt.f32 %v1806_v42  ;;  %v1807_v30 = vadd.f32 1e-05, %v1805_v28 }
 0xbfc   : > { %2746 = vrsqrt.f32 %v1807_v30 }
 0xc04   : > { %v2745_v46 = vpop.eup %2744 }
 0xc05   : > { %v1810_v13 = vmul.f32 %v2745_v46, %v1794_v35 }
 0xc06   : > { %v2747_v47 = vpop.eup %2746 }
 0xc07   : > { %v1816_v48 = vmul.f32 %v1815_v44, %v1810_v13  ;;  %v1811_v49 = vmul.f32 %v2747_v47, %v1795_v33  ;;  %v1935_v33 = vsub.s32 5, %v3124_v10 }
 0xc09   : > { %v1817_v51 = vmul.f32 %v1815_v44, %v1811_v49  ;;  %v3146_v52 = vadd.f32 %v1821_v50, %v1816_v48  ;;  %v1936_v37 = vrot.slane %v3128_v12, %v1935_v33 }
 0xc0b   : > { %v3148_v53 = vadd.f32 %v1821_v50, %v1817_v51 }
 0xc0d   : > { %v2432_v54 = vpack.c.bf16 %v3148_v53, %v3146_v52 }
 0xc0f   : > { %2625 = vmatmul.mubr.msk.bf16.vlgmr.msra.gmra.mrb[48].mxu1 %vm598_vm2, %v2432_v54 }
 0xce2   : > { %v1890_v0 = vpop.f32.mrb[48].mxu1 }
 0xce3   : > { %v1891_v1 = vadd.f32 %v2399_v63, %v1890_v0  ;;  %v2626_v2 = vpop.f32.mrb[49].mxu1 }
 0xce4   : > { %v1893_v4 = vpop.f32.mrb[50].mxu1 }
 0xce5   : > { %v1897_v7 = vpack.c.bf16 %v1891_v1, %v1891_v1  ;;  %v1894_v8 = vadd.f32 %v2399_v63, %v1893_v4  ;;  %v2627_v9 = vpop.f32.mrb[51].mxu1 }
 0xce6   : > { %v2795_v9 = vmov (!%p2413_p6), 0.0  }
 0xce7   : > { %v1901_v11 = vmul.bf16 1027030327, %v1897_v7  ;;  %v1898_v14 = vpack.c.bf16 %v1894_v8, %v1894_v8  ;;  %v1899_v32 = vmul.bf16 1056980736, %v1897_v7  ;;  %2648 = vmatprep.subr.bf16.mxu0 (!%p2413_p6), %v2795_v9  ;;  %2654 = vmatprep.subr.bf16.mxu1 (!%p2413_p6), %v2795_v9 }
 0xce8   : > { %2656 = vmatprep.mubr.msk.bf16.mxu1 (!%p2413_p6), %vm2796_vm5, %v2795_v9 }
 0xce9   : > { %v1903_v15 = vmul.bf16 %v1901_v11, %v1897_v7  ;;  %v1902_v17 = vmul.bf16 1027030327, %v1898_v14  ;;  %v1900_v29 = vmul.bf16 1056980736, %v1898_v14 }
 0xceb   : > { %v1905_v18 = vmul.bf16 %v1903_v15, %v1897_v7  ;;  %v1904_v19 = vmul.bf16 %v1902_v17, %v1898_v14  ;;  %v2797_v15 = vmov (!%p2413_p6), 0   ;;  %v2757_v17 = vld [vmem:[%s3235_s9] sm:$0xff] (!%p2413_p6)  }
 0xcec   : > { %2756 = vset.pattern.permute.xlu0 (!%p2413_p6), %v2797_v15 }
 0xced   : > { %v1907_v3 = vadd.bf16 %v1905_v18, %v1897_v7  ;;  %v1906_v20 = vmul.bf16 %v1904_v19, %v1898_v14  ;;  %v2081_v18 = vld [vmem:[%s3236_s10 + $0x8] sm:$0xff] (!%p2413_p6) }
 0xcef   : > { %v1909_v21 = vmul.bf16 1061961548, %v1907_v3  ;;  %v1908_v22 = vadd.bf16 %v1906_v20, %v1898_v14  ;;  %v2080_v14 = vld [vmem:[%s3236_s10] sm:$0xff] (!%p2413_p6) }
 0xcf1   : > { %v1910_v24 = vmul.bf16 1061961548, %v1908_v22  ;;  %2748 = vtanh.bf16 %v1909_v21 }
 0xcf3   : > { %2750 = vtanh.bf16 %v1910_v24 }
 0xcfc   : > { %v2749_v26 = vpop.eup %2748 }
 0xcfd   : > { %v1913_v27 = vadd.bf16 1065369472, %v2749_v26 }
 0xcfe   : > { %v2751_v31 = vpop.eup %2750 }
 0xcff   : > { %v1914_v34 = vadd.bf16 1065369472, %v2751_v31  ;;  %v1915_v23 = vmul.bf16 %v1913_v27, %v1899_v32 }
 0xd01   : > { %v1916_v35 = vmul.bf16 %v1914_v34, %v1900_v29 }
 0xd03   : > { %v2404_v36 = vcombine.low %v1915_v23, %v1916_v35 }
 0xd05   : > { %2645 = vmatmul.mubr.bf16.vlgmr.msra.gmra.mrb[36].mxu0 %v2404_v36 }
 0xd06   : > { %2650 = vmatprep.mubr.msk.bf16.mxu0 (!%p2413_p6), %vm2796_vm5, %v2795_v9 }
 0xdd8   : > { %v2025_v38 = vpop.f32.mrb[36].mxu0 }
 0xdd9   : > { %v2026_v5 = vadd.f32 %v2025_v38, %v1936_v37  ;;  %v2646_v39 = vpop.f32.mrb[37].mxu0 }
 0xdda   : > { %v2028_v6 = vpop.f32.mrb[38].mxu0 }
 0xddb   : > { %v2029_v16 = vadd.f32 %v2028_v6, %v1936_v37  ;;  %v2647_v25 = vpop.f32.mrb[39].mxu0  ;;  %v2032_v40 = vadd.f32 %v2026_v5, %v3146_v52 }
 0xddd   : > { %v2034_v41 = vsel %vm598_vm2, %v2032_v40, 0.0  ;;  %v2033_v42 = vadd.f32 %v2029_v16, %v3148_v53 }
 0xdde   : > { %2035 = vadd.xlane.f32.xlu0 %v2034_v41 }
 0xddf   : > { %v2037_v28 = vsel %vm598_vm2, %v2033_v42, 0.0 }
 0xde0   : > { %2038 = vadd.xlane.f32.xlu1 %v2037_v28 }
 0xe6b   : > { %v2036_v30 = vpop.xlane.xlu0 %2035 }
 0xe6c   : > { %v2040_v43 = vmul.f32 0.03125, %v2036_v30 }
 0xe6d   : > { %v2039_v44 = vpop.xlane.xlu1 %2038 }
 0xe6e   : > { %v2042_v45 = vsub.f32 %v2032_v40, %v2040_v43  ;;  %v2041_v46 = vmul.f32 0.03125, %v2039_v44 }
 0xe70   : > { %v2043_v13 = vsub.f32 %v2033_v42, %v2041_v46  ;;  %v2044_v47 = vmul.f32 %v2042_v45, %v2042_v45 }
 0xe72   : > { %v2046_v48 = vsel %vm598_vm2, %v2044_v47, 0.0  ;;  %v2045_v49 = vmul.f32 %v2043_v13, %v2043_v13 }
 0xe73   : > { %2047 = vadd.xlane.f32.xlu0 %v2046_v48 }
 0xe74   : > { %v2049_v50 = vsel %vm598_vm2, %v2045_v49, 0.0 }
 0xe75   : > { %2050 = vadd.xlane.f32.xlu1 %v2049_v50 }
 0xe89   : > { %2086 = vperm.xlu0 (!%p2413_p6), %2756, %v2080_v14  }
 0xe8d   : > { %2091 = vperm.xlu0 (!%p2413_p6), %2756, %v2081_v18  }
 0xf00   : > { %v2048_v51 = vpop.xlane.xlu0 %2047 }
 0xf01   : > { %v2052_v52 = vmul.f32 0.03125, %v2048_v51 }
 0xf02   : > { %v2051_v53 = vpop.xlane.xlu1 %2050 }
 0xf03   : > { %v2054_v54 = vadd.f32 1e-05, %v2052_v52  ;;  %v2053_v55 = vmul.f32 0.03125, %v2051_v53 }
 0xf05   : > { %2752 = vrsqrt.f32 %v2054_v54  ;;  %v2055_v56 = vadd.f32 1e-05, %v2053_v55 }
 0xf07   : > { %2754 = vrsqrt.f32 %v2055_v56 }
 0xf08   : > { %v2087_v19 = vpop.permute.xlu0 (!%p2413_p6), %2086 }
 0xf0c   : > { %v2092_v3 = vpop.permute.xlu0 (!%p2413_p6), %2091 }
 0xf0f   : > { %v2753_v60 = vpop.eup %2752 }
 0xf10   : > { %v2058_v62 = vmul.f32 %v2753_v60, %v2042_v45 }
 0xf11   : > { %v2755_v63 = vpop.eup %2754 }
 0xf12   : > { %v2064_v0 = vmul.f32 %v2063_v59, %v2058_v62  ;;  %v2059_v1 = vmul.f32 %v2755_v63, %v2043_v13  ;;  %2077 = sbr.rel (%p2413_p6) target bundleno = 4091 (0xffb), region = 72 }
 0xf14   : > { %v2070_v2 = vadd.f32 %v2069_v61, %v2064_v0  ;;  %v2065_v4 = vmul.f32 %v2063_v59, %v2059_v1 }
 0xf16   : > { %2072 = vst.msk [vmem:[#allocation2] sm:$0xff] %vm598_vm2, %v2070_v2  ;;  %v2071_v7 = vadd.f32 %v2069_v61, %v2065_v4  ;;  %v2082_v10 = vpack.c.bf16 (!%p2413_p6), %v2070_v2, %v2070_v2 }
 0xf18   : > { %2073 = vst.msk [vmem:[#allocation2 + $0x8] sm:$0xff] %vm598_vm2, %v2071_v7  ;;  %v2083_v8 = vpack.c.bf16 (!%p2413_p6), %v2071_v7, %v2071_v7  ;;  %v2103_v12 = vsel (!%p2413_p6), %vm598_vm2, %v2082_v10, 0 }
 0xf19   : > { %2649 = vmatpush3.bf16.xpose.msra.mxu0 %v2103_v12 }
 0xf1a   : > { %v2149_v11 = vsel %vm598_vm2, %v2083_v8, 0 }
 0xf1b   : > { %2655 = vmatpush3.bf16.xpose.msra.mxu1 %v2149_v11 }
 0xf20   : > { %2651 = vmatmul.mubr.msk.bf16.vlgmr.msra.gmra.mrb[0].mxu0 %vm598_vm2, %v2757_v17 }
 0xf22   : > { %2657 = vmatmul.mubr.msk.bf16.vlgmr.msra.gmra.mrb[0].mxu1 %vm598_vm2, %v2757_v17 }
 0xff3   : > { %v2139_v20 = vpop.f32.mrb[0].mxu0 }
 0xff4   : > { %v2140_v22 = vadd.f32 %v2139_v20, %v2087_v19  ;;  %v2652_v26 = vpop.f32.mrb[1].mxu0 }
 0xff5   : > { %v2185_v21 = vpop.f32.mrb[0].mxu1  ;;  %v2142_v31 = vpop.f32.mrb[2].mxu0 }
 0xff6   : > { %v2186_v24 = vadd.f32 %v2185_v21, %v2087_v19  ;;  %v2658_v27 = vpop.f32.mrb[1].mxu1  ;;  %2146 = vst.msk [vmem:[%s3237_s11] sm:$0xff] %vm664_vm3, %v2140_v22  ;;  %v2143_v29 = vadd.f32 %v2142_v31, %v2092_v3  ;;  %v2653_v23 = vpop.f32.mrb[3].mxu0 }
 0xff7   : > { %v2188_v32 = vpop.f32.mrb[2].mxu1 }
 0xff8   : > { %2417 = vst.msk [vmem:[%s3237_s11 + $0x10] sm:$0xff] %vm664_vm3, %v2186_v24  ;;  %v2189_v34 = vadd.f32 %v2188_v32, %v2092_v3  ;;  %v2659_v35 = vpop.f32.mrb[3].mxu1  ;;  %2147 = vst.msk [vmem:[%s3237_s11 + $0x8] sm:$0xff] %vm664_vm3, %v2143_v29 }
 0xffa   : > { %2418 = vst.msk [vmem:[%s3237_s11 + $0x18] sm:$0xff] %vm664_vm3, %v2189_v34 }
 0xffb PF: > { %s3247_s30 = sld [smem:[#allocation4_spill]]  ;;  %s3248_s17 = sld [smem:[#allocation3_spill]] }
 0xffc   : > { %s3249_s18 = sld [smem:[#allocation5_spill]] }
0x1001   : > { %s21_s19 = sadd.s32 1, %s3247_s30  }
0x1002   : > { %p18_p7 = scmp.ge.s32.totalorder %s21_s19, 4  }
0x1004   :  { %20 = sbr.rel (!%p18_p7) target bundleno = 3 (0x3), region = 127 }

</bundles_post_ra>
